<compile_context>
chip_gen: v7x
topology: tpu7x:2x2x1
jax: 0.10.0
libtpu: 0.0.40
codegen_flags: <defaults>
</compile_context>

<pallas_src>
import math
import functools

import jax
import jax.numpy as jnp
from jax import lax
from jax.experimental import pallas as pl
from jax.experimental.pallas import tpu as pltpu

_LANE = 128
_SUBLANE = 8
_HIGH = lax.Precision.HIGHEST


def _round_up(v, m):
    return ((v + m - 1) // m) * m


# --------------------------------------------------------------------------------------
# Pallas kernel: full forward pass for one graph (one grid step).
# --------------------------------------------------------------------------------------
def _make_kernel(use_take_gather):
    def kernel(x_ref, src_ref, tgt_ref, ea_ref, dinv_ref,
               We_ref, be_ref, W1_ref, b1_ref, W2_ref, b2_ref, Wh_ref, bh_ref,
               z_ref):
        f32 = jnp.float32
        x = x_ref[...]        # (Np, c_in_p) node features (zero-padded rows/lanes)
        tgt = tgt_ref[...]    # (1, Ep)      int32 targets; padded entries = -1
        ea = ea_ref[...]      # (Ep, De_p)   edge attributes
        dinv = dinv_ref[...]  # (Np, 1)      1/sqrt(in_degree + 1)

        Np = x.shape[0]
        Ep = ea.shape[0]
        c_in_p = x.shape[1]

        # Target-side one-hot: the scatter-sum really is a matmul-shaped reduction (MXU).
        # Padded edges have tgt = -1 -> all-zero column -> they contribute nothing.
        Tt = (lax.broadcasted_iota(jnp.int32, (Np, Ep), 0) == tgt).astype(f32)

        if use_take_gather:
            src_idx = src_ref[0]  # (Ep,) int32, lane-major

            def gather_rows(h):   # h[src]: pure selection, no one-hot / no MXU pass
                return jnp.take(h, src_idx, axis=0, mode="clip")
        else:
            # Fallback: dense one-hot gather (previously validated lowering).
            src_col = src_ref[...]  # (Ep, 1) int32
            S = (lax.broadcasted_iota(jnp.int32, (Ep, Np), 1) == src_col).astype(f32)

            def gather_rows(h):
                return jnp.dot(S, h, preferred_element_type=f32, precision=_HIGH)

        # Both GINEConv edge linears in a single MXU pass; slices sit on 128-lane bounds.
        e_all = (jnp.dot(ea, We_ref[...], preferred_element_type=f32, precision=_HIGH)
                 + be_ref[...])
        e1 = e_all[:, :c_in_p]
        e2 = e_all[:, c_in_p:]

        def gine_layer(h, e, W, b):
            m = jnp.maximum(gather_rows(h) + e, 0.0)                           # relu(x_j + lin(e))
            agg = jnp.dot(Tt, m, preferred_element_type=f32, precision=_HIGH)  # sum at targets
            out = jnp.dot(h + agg, W, preferred_element_type=f32, precision=_HIGH) + b
            return jnp.maximum(out, 0.0)                                       # outer .relu()

        h = gine_layer(x, e1, W1_ref[...], b1_ref[...])
        h = gine_layer(h, e2, W2_ref[...], b2_ref[...])

        # Fused GCN heads: z = D^-1/2 (A + I) D^-1/2 h [Wmu | Wls] + [bmu | bls].
        if h.shape[1] <= Wh_ref.shape[1]:
            # Propagate the (narrower/equal) hidden features first, then project once.
            hs = dinv * h
            prop = jnp.dot(Tt, gather_rows(hs), preferred_element_type=f32,
                           precision=_HIGH) + hs
            z = jnp.dot(dinv * prop, Wh_ref[...], preferred_element_type=f32,
                        precision=_HIGH) + bh_ref[...]
        else:
            # Project first, then propagate the (narrower) head features.
            hw = jnp.dot(h, Wh_ref[...], preferred_element_type=f32, precision=_HIGH)
            hws = dinv * hw
            prop = jnp.dot(Tt, gather_rows(hws), preferred_element_type=f32,
                           precision=_HIGH) + hws
            z = dinv * prop + bh_ref[...]
        z_ref[...] = z  # (Np, 128): lane-dense, unmasked stores

    return kernel


# --------------------------------------------------------------------------------------
# pallas_call builder.
# --------------------------------------------------------------------------------------
def _run_kernel(use_take_gather, *, x_p, src_p, tgt_p, ea_p, dinv_p, weights):
    B, Np, c_in_p = x_p.shape
    Ep, De_p = ea_p.shape[1], ea_p.shape[2]
    c1_p = weights[3].shape[1]   # b1
    c2_p = weights[5].shape[1]   # b2
    ch_p = weights[7].shape[1]   # bh

    if use_take_gather:
        src_arr = src_p.reshape(B, 1, Ep)    # lane-major index row for jnp.take
    else:
        src_arr = src_p.reshape(B, Ep, 1)    # column layout for the one-hot fallback
    tgt_arr = tgt_p.reshape(B, 1, Ep)

    def per_graph(shape):
        shape = tuple(shape)
        return pl.BlockSpec((None,) + shape, lambda b: (b,) + (0,) * len(shape))

    def shared(arr):
        return pl.BlockSpec(arr.shape, lambda b: (0,) * arr.ndim)

    in_specs = ([per_graph(x_p.shape[1:]), per_graph(src_arr.shape[1:]),
                 per_graph(tgt_arr.shape[1:]), per_graph(ea_p.shape[1:]),
                 per_graph(dinv_p.shape[1:])]
                + [shared(w) for w in weights])
    out_spec = per_graph((Np, ch_p))

    # Scoped-VMEM sizing: structural one-hot(s) + edge message buffers + hidden blocks +
    # weights + double-buffered I/O, with ~2x headroom; capped at v7x's 64 MiB physical.
    cmax = max(c_in_p, c1_p, c2_p, ch_p)
    w_bytes = 4 * sum(int(w.size) for w in weights)
    est = 4 * (2 * Np * Ep
               + 4 * Ep * (c_in_p + c1_p)
               + 8 * Np * cmax
               + 2 * (Np * c_in_p + Ep * De_p + 2 * Ep + Np + Np * ch_p)) + 2 * w_bytes
    vmem_limit = int(min(max(2 * est, 32 << 20), 64 << 20))

    flops = B * (2 * Ep * De_p * (c_in_p + c1_p)
                 + 2 * Np * Ep * (c_in_p + c1_p + min(c2_p, ch_p))
                 + 2 * Np * (c_in_p * c1_p + c1_p * c2_p + c2_p * ch_p))
    bytes_accessed = (4 * B * (Np * c_in_p + Ep * De_p + 2 * Ep + Np + Np * ch_p)
                      + w_bytes)
    cost = pl.CostEstimate(flops=int(flops), transcendentals=0,
                           bytes_accessed=int(bytes_accessed))

    return pl.pallas_call(
        _make_kernel(use_take_gather),
        out_shape=jax.ShapeDtypeStruct((B, Np, ch_p), jnp.float32),
        grid=(B,),
        in_specs=in_specs,
        out_specs=out_spec,
        compiler_params=pltpu.CompilerParams(
            dimension_semantics=("parallel",), vmem_limit_bytes=vmem_limit),
        cost_estimate=cost,
    )(x_p, src_arr, tgt_arr, ea_p, dinv_p, *weights)


# --------------------------------------------------------------------------------------
# JAX wrappers.
# --------------------------------------------------------------------------------------
_TAKE_GATHER_OK = None  # resolved on first call: does the jnp.take row-gather lower+verify?


def vpfae_gine_forward_batched(x, edge_index, edge_attr, params):
    """x: (B,N,Cin) f32, edge_index: (B,2,E) int, edge_attr: (B,E,De) f32."""
    global _TAKE_GATHER_OK
    f32 = jnp.float32
    B, N, c_in = x.shape
    E, De = edge_attr.shape[1], edge_attr.shape[2]
    c1 = params["W1"].shape[1]
    c2 = params["W2"].shape[1]
    out_channels = params["Wmu"].shape[1]

    Np = _round_up(N, _SUBLANE)
    Ep = _round_up(E, _SUBLANE)
    De_p = _round_up(De, _SUBLANE)
    c_in_p = _round_up(c_in, _LANE)
    c1_p = _round_up(c1, _LANE)
    c2_p = _round_up(c2, _LANE)
    ch_p = _round_up(2 * out_channels, _LANE)

    pad2 = lambda a, r, c: jnp.pad(a, ((0, r - a.shape[0]), (0, c - a.shape[1])))

    # Zero-padding is exact: padded rows/cols of weights are zero, padded nodes never feed
    # real nodes, padded edges carry tgt = -1 and are dropped by the one-hot scatter.
    x_p = jnp.pad(x.astype(f32), ((0, 0), (0, Np - N), (0, c_in_p - c_in)))
    ea_p = jnp.pad(edge_attr.astype(f32), ((0, 0), (0, Ep - E), (0, De_p - De)))

    src = edge_index[:, 0, :].astype(jnp.int32)
    tgt = edge_index[:, 1, :].astype(jnp.int32)
    src_p = jnp.pad(src, ((0, 0), (0, Ep - E)))                      # -> node 0 (dropped via tgt)
    tgt_p = jnp.pad(tgt, ((0, 0), (0, Ep - E)), constant_values=-1)  # matches no row

    # D^-1/2 with self loops, precomputed outside the kernel (tiny segment_sum).
    ones_e = jnp.ones((E,), f32)
    deg = jax.vmap(lambda t: jax.ops.segment_sum(ones_e, t, num_segments=N))(tgt) + 1.0
    dinv = 1.0 / jnp.sqrt(deg)
    dinv_p = jnp.pad(dinv, ((0, 0), (0, Np - N)), constant_values=1.0).reshape(B, Np, 1)

    # Fused + padded weights: both edge linears lane-concatenated, both GCN heads fused.
    We_all = jnp.concatenate([pad2(params["We1"], De_p, c_in_p),
                              pad2(params["We2"], De_p, c1_p)], axis=1)
    be_all = jnp.concatenate([pad2(params["be1"], 1, c_in_p),
                              pad2(params["be2"], 1, c1_p)], axis=1)
    W1_p, b1_p = pad2(params["W1"], c_in_p, c1_p), pad2(params["b1"], 1, c1_p)
    W2_p, b2_p = pad2(params["W2"], c1_p, c2_p), pad2(params["b2"], 1, c2_p)
    Wh_p = pad2(jnp.concatenate([params["Wmu"], params["Wls"]], axis=1), c2_p, ch_p)
    bh_p = pad2(jnp.concatenate([params["bmu"], params["bls"]], axis=1), 1, ch_p)
    weights = (We_all, be_all, W1_p, b1_p, W2_p, b2_p, Wh_p, bh_p)

    run = functools.partial(_run_kernel, x_p=x_p, src_p=src_p, tgt_p=tgt_p,
                            ea_p=ea_p, dinv_p=dinv_p, weights=weights)

    if _TAKE_GATHER_OK is None:
        # First call: compile the known-good one-hot path, and cache whether the jnp.take
        # row-gather path both lowers and matches it bit-for-bit (within tolerance).
        z_ref = run(False)
        jax.block_until_ready(z_ref)
        try:
            z_take = run(True)
            jax.block_until_ready(z_take)
            ok = bool(jnp.allclose(z_take, z_ref, atol=1e-5, rtol=1e-5))
        except Exception:
            ok = False
        _TAKE_GATHER_OK = ok
        z = z_take if ok else z_ref
    else:
        z = run(_TAKE_GATHER_OK)

    mu = z[:, :N, :out_channels]
    logstd = z[:, :N, out_channels:2 * out_channels]
    return mu, logstd


def vpfae_gine_forward(x, edge_index, edge_attr, params):
    """Single-graph forward matching the torch module's signature."""
    mu, logstd = vpfae_gine_forward_batched(x[None], edge_index[None], edge_attr[None],
                                            params)
    return mu[0], logstd[0]


# --------------------------------------------------------------------------------------
# Deterministic parameter init (same shapes the torch module's __init__ implies).
# Weights stored transposed (fan_in, fan_out) so the kernel does  x @ W + b.
# --------------------------------------------------------------------------------------
def init_params(key, in_channels, out_channels, edge_features):
    layer1_out = in_channels - math.floor((in_channels - out_channels) / 3)
    layer2_out = in_channels - math.floor(2 * (in_channels - out_channels) / 3)

    def linear(k, fan_in, fan_out):
        bound = 1.0 / math.sqrt(fan_in)
        kw, kb = jax.random.split(k)
        W = jax.random.uniform(kw, (fan_in, fan_out), jnp.float32, -bound, bound)
        b = jax.random.uniform(kb, (1, fan_out), jnp.float32, -bound, bound)
        return W, b

    ks = jax.random.split(key, 6)
    We1, be1 = linear(ks[0], edge_features, in_channels)   # GINEConv1.lin (edge_dim -> in)
    W1, b1 = linear(ks[1], in_channels, layer1_out)        # GINEConv1.nn  (Linear)
    We2, be2 = linear(ks[2], edge_features, layer1_out)    # GINEConv2.lin
    W2, b2 = linear(ks[3], layer1_out, layer2_out)         # GINEConv2.nn
    Wmu, _ = linear(ks[4], layer2_out, out_channels)       # GCNConv mu (lin has no bias)
    Wls, _ = linear(ks[5], layer2_out, out_channels)       # GCNConv logstd
    bmu = jnp.zeros((1, out_channels), jnp.float32)        # GCNConv bias init = zeros
    bls = jnp.zeros((1, out_channels), jnp.float32)
    return dict(We1=We1, be1=be1, W1=W1, b1=b1,
                We2=We2, be2=be2, W2=W2, b2=b2,
                Wmu=Wmu, bmu=bmu, Wls=Wls, bls=bls)


# --------------------------------------------------------------------------------------
# Pure-JAX reference (scatter/gather form) for a correctness check, single graph.
# --------------------------------------------------------------------------------------
def ref_forward(x, edge_index, edge_attr, params):
    N = x.shape[0]
    src, tgt = edge_index[0], edge_index[1]
    dot = functools.partial(jnp.dot, precision=_HIGH)

    def gine(h, We, be, W, b):
        e = dot(edge_attr, We) + be
        m = jax.nn.relu(h[src] + e)
        agg = jax.ops.segment_sum(m, tgt, num_segments=N)
        return jax.nn.relu(dot(h + agg, W) + b)

    h = gine(x, params["We1"], params["be1"], params["W1"], params["b1"])
    h = gine(h, params["We2"], params["be2"], params["W2"], params["b2"])

    row = jnp.concatenate([src, jnp.arange(N, dtype=src.dtype)])
    col = jnp.concatenate([tgt, jnp.arange(N, dtype=tgt.dtype)])
    deg = jax.ops.segment_sum(jnp.ones(row.shape, jnp.float32), col, num_segments=N)
    dinv = jnp.where(deg > 0, 1.0 / jnp.sqrt(deg), 0.0)
    norm = dinv[row] * dinv[col]

    def gcn(h, W, b):
        hw = dot(h, W)
        msg = hw[row] * norm[:, None]
        return jax.ops.segment_sum(msg, col, num_segments=N) + b

    return gcn(h, params["Wmu"], params["bmu"]), gcn(h, params["Wls"], params["bls"])


if __name__ == "__main__":
    key = jax.random.PRNGKey(0)
    B, N, E = 2, 16, 32
    in_channels, out_channels, edge_features = 16, 8, 4

    k_x, k_ei, k_ea, k_p = jax.random.split(key, 4)
    x = jax.random.normal(k_x, (B, N, in_channels), jnp.float32)
    edge_index = jax.random.randint(k_ei, (B, 2, E), 0, N, dtype=jnp.int32)
    edge_attr = jax.random.normal(k_ea, (B, E, edge_features), jnp.float32)
    params = init_params(k_p, in_channels, out_channels, edge_features)

    mu, logstd = vpfae_gine_forward_batched(x, edge_index, edge_attr, params)
    jax.block_until_ready((mu, logstd))

    for b in range(B):
        mu_ref, ls_ref = ref_forward(x[b], edge_index[b], edge_attr[b], params)
        assert jnp.allclose(mu[b], mu_ref, atol=1e-4, rtol=1e-4)
        assert jnp.allclose(logstd[b], ls_ref, atol=1e-4, rtol=1e-4)

    # Single-graph API (matches the torch module's forward signature).
    mu0, ls0 = vpfae_gine_forward(x[0], edge_index[0], edge_attr[0], params)
    jax.block_until_ready((mu0, ls0))
    assert jnp.allclose(mu0, mu[0], atol=1e-5, rtol=1e-5)
    assert jnp.allclose(ls0, logstd[0], atol=1e-5, rtol=1e-5)

    print("KERNEL_OK")
</pallas_src>

<mosaic_0001>
module attributes {stable_mosaic.version = 11 : i64} {
  func.func @kernel(%arg0: i32, %arg1: memref<1x16x128xf32, #tpu.memory_space<vmem>>, %arg2: memref<1x32x1xi32, #tpu.memory_space<vmem>>, %arg3: memref<1x1x32xi32, #tpu.memory_space<vmem>>, %arg4: memref<1x32x8xf32, #tpu.memory_space<vmem>>, %arg5: memref<1x16x1xf32, #tpu.memory_space<vmem>>, %arg6: memref<8x256xf32, #tpu.memory_space<vmem>>, %arg7: memref<1x256xf32, #tpu.memory_space<vmem>>, %arg8: memref<128x128xf32, #tpu.memory_space<vmem>>, %arg9: memref<1x128xf32, #tpu.memory_space<vmem>>, %arg10: memref<128x128xf32, #tpu.memory_space<vmem>>, %arg11: memref<1x128xf32, #tpu.memory_space<vmem>>, %arg12: memref<128x128xf32, #tpu.memory_space<vmem>>, %arg13: memref<1x128xf32, #tpu.memory_space<vmem>>, %arg14: memref<1x16x128xf32, #tpu.memory_space<vmem>>) attributes {dimension_semantics = [#tpu.dimension_semantics<parallel>], iteration_bounds = array<i64: 2>, scalar_prefetch = 0 : i64, scratch_operands = 0 : i64, tpu.core_type = #tpu.core_type<tc>, window_params = [{transform_indices = @transform_0, window_bounds = array<i64: 1, 16, 128>}, {transform_indices = @transform_1, window_bounds = array<i64: 1, 32, 1>}, {transform_indices = @transform_2, window_bounds = array<i64: 1, 1, 32>}, {transform_indices = @transform_3, window_bounds = array<i64: 1, 32, 8>}, {transform_indices = @transform_4, window_bounds = array<i64: 1, 16, 1>}, {pipeline_mode = #tpu.pipeline_mode<synchronous>, transform_indices = @transform_5, window_bounds = array<i64: 8, 256>}, {pipeline_mode = #tpu.pipeline_mode<synchronous>, transform_indices = @transform_6, window_bounds = array<i64: 1, 256>}, {pipeline_mode = #tpu.pipeline_mode<synchronous>, transform_indices = @transform_7, window_bounds = array<i64: 128, 128>}, {pipeline_mode = #tpu.pipeline_mode<synchronous>, transform_indices = @transform_8, window_bounds = array<i64: 1, 128>}, {pipeline_mode = #tpu.pipeline_mode<synchronous>, transform_indices = @transform_9, window_bounds = array<i64: 128, 128>}, {pipeline_mode = #tpu.pipeline_mode<synchronous>, transform_indices = @transform_10, window_bounds = array<i64: 1, 128>}, {pipeline_mode = #tpu.pipeline_mode<synchronous>, transform_indices = @transform_11, window_bounds = array<i64: 128, 128>}, {pipeline_mode = #tpu.pipeline_mode<synchronous>, transform_indices = @transform_12, window_bounds = array<i64: 1, 128>}, {transform_indices = @transform_13, window_bounds = array<i64: 1, 16, 128>}]} {
    %c0 = arith.constant 0 : index
    %c0_0 = arith.constant 0 : index
    %c0_1 = arith.constant 0 : index
    %0 = vector.load %arg1[%c0, %c0_0, %c0_1] : memref<1x16x128xf32, #tpu.memory_space<vmem>>, vector<1x16x128xf32>
    %1 = vector.shape_cast %0 : vector<1x16x128xf32> to vector<16x128xf32>
    %c0_2 = arith.constant 0 : index
    %c0_3 = arith.constant 0 : index
    %c0_4 = arith.constant 0 : index
    %2 = vector.load %arg3[%c0_2, %c0_3, %c0_4] : memref<1x1x32xi32, #tpu.memory_space<vmem>>, vector<1x1x32xi32>
    %3 = vector.shape_cast %2 : vector<1x1x32xi32> to vector<1x32xi32>
    %c0_5 = arith.constant 0 : index
    %c0_6 = arith.constant 0 : index
    %c0_7 = arith.constant 0 : index
    %4 = vector.load %arg4[%c0_5, %c0_6, %c0_7] : memref<1x32x8xf32, #tpu.memory_space<vmem>>, vector<1x32x8xf32>
    %5 = vector.shape_cast %4 : vector<1x32x8xf32> to vector<32x8xf32>
    %c0_8 = arith.constant 0 : index
    %c0_9 = arith.constant 0 : index
    %c0_10 = arith.constant 0 : index
    %6 = vector.load %arg5[%c0_8, %c0_9, %c0_10] : memref<1x16x1xf32, #tpu.memory_space<vmem>>, vector<1x16x1xf32>
    %7 = vector.shape_cast %6 : vector<1x16x1xf32> to vector<16x1xf32>
    %8 = tpu.iota {dimensions = array<i32: 0>} : vector<16x32xi32>
    %9 = vector.broadcast %3 : vector<1x32xi32> to vector<16x32xi32>
    %10 = arith.cmpi eq, %8, %9 : vector<16x32xi32>
    %11 = arith.extui %10 : vector<16x32xi1> to vector<16x32xi32>
    %12 = arith.sitofp %11 : vector<16x32xi32> to vector<16x32xf32>
    %c0_11 = arith.constant 0 : index
    %c0_12 = arith.constant 0 : index
    %c0_13 = arith.constant 0 : index
    %13 = vector.load %arg2[%c0_11, %c0_12, %c0_13] : memref<1x32x1xi32, #tpu.memory_space<vmem>>, vector<1x32x1xi32>
    %14 = vector.shape_cast %13 : vector<1x32x1xi32> to vector<32x1xi32>
    %15 = tpu.iota {dimensions = array<i32: 1>} : vector<32x16xi32>
    %16 = vector.broadcast %14 : vector<32x1xi32> to vector<32x16xi32>
    %17 = arith.cmpi eq, %15, %16 : vector<32x16xi32>
    %18 = arith.extui %17 : vector<32x16xi1> to vector<32x16xi32>
    %19 = arith.sitofp %18 : vector<32x16xi32> to vector<32x16xf32>
    %c0_14 = arith.constant 0 : index
    %c0_15 = arith.constant 0 : index
    %20 = vector.load %arg6[%c0_14, %c0_15] : memref<8x256xf32, #tpu.memory_space<vmem>>, vector<8x256xf32>
    %cst = arith.constant dense<0.000000e+00> : vector<32x256xf32>
    %21 = tpu.matmul %5, %20, %cst {dimension_numbers = #tpu.dot_dimension_numbers<[1], [0], [0], [1], [0, 0, 1, 1], [], []>, precision = #tpu.contract_precision<fp32>} : vector<32x8xf32>, vector<8x256xf32>, vector<32x256xf32> -> vector<32x256xf32>
    %c0_16 = arith.constant 0 : index
    %c0_17 = arith.constant 0 : index
    %22 = vector.load %arg7[%c0_16, %c0_17] : memref<1x256xf32, #tpu.memory_space<vmem>>, vector<1x256xf32>
    %23 = vector.broadcast %22 : vector<1x256xf32> to vector<32x256xf32>
    %24 = arith.addf %21, %23 : vector<32x256xf32>
    %25 = vector.extract_strided_slice %24 {offsets = [0, 0], sizes = [32, 128], strides = [1, 1]} : vector<32x256xf32> to vector<32x128xf32>
    %26 = vector.extract_strided_slice %24 {offsets = [0, 128], sizes = [32, 128], strides = [1, 1]} : vector<32x256xf32> to vector<32x128xf32>
    %c0_18 = arith.constant 0 : index
    %c0_19 = arith.constant 0 : index
    %27 = vector.load %arg8[%c0_18, %c0_19] : memref<128x128xf32, #tpu.memory_space<vmem>>, vector<128x128xf32>
    %c0_20 = arith.constant 0 : index
    %c0_21 = arith.constant 0 : index
    %28 = vector.load %arg9[%c0_20, %c0_21] : memref<1x128xf32, #tpu.memory_space<vmem>>, vector<1x128xf32>
    %cst_22 = arith.constant dense<0.000000e+00> : vector<32x128xf32>
    %29 = tpu.matmul %19, %1, %cst_22 {dimension_numbers = #tpu.dot_dimension_numbers<[1], [0], [0], [1], [0, 0, 1, 1], [], []>, precision = #tpu.contract_precision<fp32>} : vector<32x16xf32>, vector<16x128xf32>, vector<32x128xf32> -> vector<32x128xf32>
    %30 = arith.addf %29, %25 : vector<32x128xf32>
    %cst_23 = arith.constant 0.000000e+00 : f32
    %31 = vector.broadcast %cst_23 : f32 to vector<32x128xf32>
    %32 = arith.maximumf %30, %31 : vector<32x128xf32>
    %cst_24 = arith.constant dense<0.000000e+00> : vector<16x128xf32>
    %33 = tpu.matmul %12, %32, %cst_24 {dimension_numbers = #tpu.dot_dimension_numbers<[1], [0], [0], [1], [0, 0, 1, 1], [], []>, precision = #tpu.contract_precision<fp32>} : vector<16x32xf32>, vector<32x128xf32>, vector<16x128xf32> -> vector<16x128xf32>
    %34 = arith.addf %1, %33 : vector<16x128xf32>
    %cst_25 = arith.constant dense<0.000000e+00> : vector<16x128xf32>
    %35 = tpu.matmul %34, %27, %cst_25 {dimension_numbers = #tpu.dot_dimension_numbers<[1], [0], [0], [1], [0, 0, 1, 1], [], []>, precision = #tpu.contract_precision<fp32>} : vector<16x128xf32>, vector<128x128xf32>, vector<16x128xf32> -> vector<16x128xf32>
    %36 = vector.broadcast %28 : vector<1x128xf32> to vector<16x128xf32>
    %37 = arith.addf %35, %36 : vector<16x128xf32>
    %cst_26 = arith.constant 0.000000e+00 : f32
    %38 = vector.broadcast %cst_26 : f32 to vector<16x128xf32>
    %39 = arith.maximumf %37, %38 : vector<16x128xf32>
    %c0_27 = arith.constant 0 : index
    %c0_28 = arith.constant 0 : index
    %40 = vector.load %arg10[%c0_27, %c0_28] : memref<128x128xf32, #tpu.memory_space<vmem>>, vector<128x128xf32>
    %c0_29 = arith.constant 0 : index
    %c0_30 = arith.constant 0 : index
    %41 = vector.load %arg11[%c0_29, %c0_30] : memref<1x128xf32, #tpu.memory_space<vmem>>, vector<1x128xf32>
    %cst_31 = arith.constant dense<0.000000e+00> : vector<32x128xf32>
    %42 = tpu.matmul %19, %39, %cst_31 {dimension_numbers = #tpu.dot_dimension_numbers<[1], [0], [0], [1], [0, 0, 1, 1], [], []>, precision = #tpu.contract_precision<fp32>} : vector<32x16xf32>, vector<16x128xf32>, vector<32x128xf32> -> vector<32x128xf32>
    %43 = arith.addf %42, %26 : vector<32x128xf32>
    %cst_32 = arith.constant 0.000000e+00 : f32
    %44 = vector.broadcast %cst_32 : f32 to vector<32x128xf32>
    %45 = arith.maximumf %43, %44 : vector<32x128xf32>
    %cst_33 = arith.constant dense<0.000000e+00> : vector<16x128xf32>
    %46 = tpu.matmul %12, %45, %cst_33 {dimension_numbers = #tpu.dot_dimension_numbers<[1], [0], [0], [1], [0, 0, 1, 1], [], []>, precision = #tpu.contract_precision<fp32>} : vector<16x32xf32>, vector<32x128xf32>, vector<16x128xf32> -> vector<16x128xf32>
    %47 = arith.addf %39, %46 : vector<16x128xf32>
    %cst_34 = arith.constant dense<0.000000e+00> : vector<16x128xf32>
    %48 = tpu.matmul %47, %40, %cst_34 {dimension_numbers = #tpu.dot_dimension_numbers<[1], [0], [0], [1], [0, 0, 1, 1], [], []>, precision = #tpu.contract_precision<fp32>} : vector<16x128xf32>, vector<128x128xf32>, vector<16x128xf32> -> vector<16x128xf32>
    %49 = vector.broadcast %41 : vector<1x128xf32> to vector<16x128xf32>
    %50 = arith.addf %48, %49 : vector<16x128xf32>
    %cst_35 = arith.constant 0.000000e+00 : f32
    %51 = vector.broadcast %cst_35 : f32 to vector<16x128xf32>
    %52 = arith.maximumf %50, %51 : vector<16x128xf32>
    %53 = vector.broadcast %7 : vector<16x1xf32> to vector<16x128xf32>
    %54 = arith.mulf %53, %52 : vector<16x128xf32>
    %cst_36 = arith.constant dense<0.000000e+00> : vector<32x128xf32>
    %55 = tpu.matmul %19, %54, %cst_36 {dimension_numbers = #tpu.dot_dimension_numbers<[1], [0], [0], [1], [0, 0, 1, 1], [], []>, precision = #tpu.contract_precision<fp32>} : vector<32x16xf32>, vector<16x128xf32>, vector<32x128xf32> -> vector<32x128xf32>
    %cst_37 = arith.constant dense<0.000000e+00> : vector<16x128xf32>
    %56 = tpu.matmul %12, %55, %cst_37 {dimension_numbers = #tpu.dot_dimension_numbers<[1], [0], [0], [1], [0, 0, 1, 1], [], []>, precision = #tpu.contract_precision<fp32>} : vector<16x32xf32>, vector<32x128xf32>, vector<16x128xf32> -> vector<16x128xf32>
    %57 = arith.addf %56, %54 : vector<16x128xf32>
    %58 = vector.broadcast %7 : vector<16x1xf32> to vector<16x128xf32>
    %59 = arith.mulf %58, %57 : vector<16x128xf32>
    %c0_38 = arith.constant 0 : index
    %c0_39 = arith.constant 0 : index
    %60 = vector.load %arg12[%c0_38, %c0_39] : memref<128x128xf32, #tpu.memory_space<vmem>>, vector<128x128xf32>
    %cst_40 = arith.constant dense<0.000000e+00> : vector<16x128xf32>
    %61 = tpu.matmul %59, %60, %cst_40 {dimension_numbers = #tpu.dot_dimension_numbers<[1], [0], [0], [1], [0, 0, 1, 1], [], []>, precision = #tpu.contract_precision<fp32>} : vector<16x128xf32>, vector<128x128xf32>, vector<16x128xf32> -> vector<16x128xf32>
    %c0_41 = arith.constant 0 : index
    %c0_42 = arith.constant 0 : index
    %62 = vector.load %arg13[%c0_41, %c0_42] : memref<1x128xf32, #tpu.memory_space<vmem>>, vector<1x128xf32>
    %63 = vector.broadcast %62 : vector<1x128xf32> to vector<16x128xf32>
    %64 = arith.addf %61, %63 : vector<16x128xf32>
    %c0_43 = arith.constant 0 : index
    %c0_44 = arith.constant 0 : index
    %c0_45 = arith.constant 0 : index
    %65 = vector.load %arg14[%c0_43, %c0_44, %c0_45] : memref<1x16x128xf32, #tpu.memory_space<vmem>>, vector<1x16x128xf32>
    %66 = vector.shape_cast %65 : vector<1x16x128xf32> to vector<16x128xf32>
    %67 = vector.shape_cast %64 : vector<16x128xf32> to vector<1x16x128xf32>
    tpu.vector_store %arg14[%c0_43, %c0_44, %c0_45], %67 {strides = array<i32>} : memref<1x16x128xf32, #tpu.memory_space<vmem>>, vector<1x16x128xf32>,
    return
  }
  func.func @transform_0(%arg0: i32) -> (i32, i32, i32) {
    %c0_i32 = arith.constant 0 : i32
    %c0_i32_0 = arith.constant 0 : i32
    %c0_i32_1 = arith.constant 0 : i32
    return %arg0, %c0_i32, %c0_i32_0 : i32, i32, i32
  }
  func.func @transform_1(%arg0: i32) -> (i32, i32, i32) {
    %c0_i32 = arith.constant 0 : i32
    %c0_i32_0 = arith.constant 0 : i32
    %c0_i32_1 = arith.constant 0 : i32
    return %arg0, %c0_i32, %c0_i32_0 : i32, i32, i32
  }
  func.func @transform_2(%arg0: i32) -> (i32, i32, i32) {
    %c0_i32 = arith.constant 0 : i32
    %c0_i32_0 = arith.constant 0 : i32
    %c0_i32_1 = arith.constant 0 : i32
    return %arg0, %c0_i32, %c0_i32_0 : i32, i32, i32
  }
  func.func @transform_3(%arg0: i32) -> (i32, i32, i32) {
    %c0_i32 = arith.constant 0 : i32
    %c0_i32_0 = arith.constant 0 : i32
    %c0_i32_1 = arith.constant 0 : i32
    return %arg0, %c0_i32, %c0_i32_0 : i32, i32, i32
  }
  func.func @transform_4(%arg0: i32) -> (i32, i32, i32) {
    %c0_i32 = arith.constant 0 : i32
    %c0_i32_0 = arith.constant 0 : i32
    %c0_i32_1 = arith.constant 0 : i32
    return %arg0, %c0_i32, %c0_i32_0 : i32, i32, i32
  }
  func.func @transform_5(%arg0: i32) -> (i32, i32) {
    %c0_i32 = arith.constant 0 : i32
    %c0_i32_0 = arith.constant 0 : i32
    %c0_i32_1 = arith.constant 0 : i32
    return %c0_i32, %c0_i32_0 : i32, i32
  }
  func.func @transform_6(%arg0: i32) -> (i32, i32) {
    %c0_i32 = arith.constant 0 : i32
    %c0_i32_0 = arith.constant 0 : i32
    %c0_i32_1 = arith.constant 0 : i32
    return %c0_i32, %c0_i32_0 : i32, i32
  }
  func.func @transform_7(%arg0: i32) -> (i32, i32) {
    %c0_i32 = arith.constant 0 : i32
    %c0_i32_0 = arith.constant 0 : i32
    %c0_i32_1 = arith.constant 0 : i32
    return %c0_i32, %c0_i32_0 : i32, i32
  }
  func.func @transform_8(%arg0: i32) -> (i32, i32) {
    %c0_i32 = arith.constant 0 : i32
    %c0_i32_0 = arith.constant 0 : i32
    %c0_i32_1 = arith.constant 0 : i32
    return %c0_i32, %c0_i32_0 : i32, i32
  }
  func.func @transform_9(%arg0: i32) -> (i32, i32) {
    %c0_i32 = arith.constant 0 : i32
    %c0_i32_0 = arith.constant 0 : i32
    %c0_i32_1 = arith.constant 0 : i32
    return %c0_i32, %c0_i32_0 : i32, i32
  }
  func.func @transform_10(%arg0: i32) -> (i32, i32) {
    %c0_i32 = arith.constant 0 : i32
    %c0_i32_0 = arith.constant 0 : i32
    %c0_i32_1 = arith.constant 0 : i32
    return %c0_i32, %c0_i32_0 : i32, i32
  }
  func.func @transform_11(%arg0: i32) -> (i32, i32) {
    %c0_i32 = arith.constant 0 : i32
    %c0_i32_0 = arith.constant 0 : i32
    %c0_i32_1 = arith.constant 0 : i32
    return %c0_i32, %c0_i32_0 : i32, i32
  }
  func.func @transform_12(%arg0: i32) -> (i32, i32) {
    %c0_i32 = arith.constant 0 : i32
    %c0_i32_0 = arith.constant 0 : i32
    %c0_i32_1 = arith.constant 0 : i32
    return %c0_i32, %c0_i32_0 : i32, i32
  }
  func.func @transform_13(%arg0: i32) -> (i32, i32, i32) {
    %c0_i32 = arith.constant 0 : i32
    %c0_i32_0 = arith.constant 0 : i32
    %c0_i32_1 = arith.constant 0 : i32
    return %arg0, %c0_i32, %c0_i32_0 : i32, i32, i32
  }
}

</mosaic_0001>

<bundles_post_ra>
// kernel: tpu_custom_call.1
= control target key start
LH: loop header
LB: loop body
LE: loop exit
PB: predicated region body
PF: predicated region fallthrough
CT: control target
= control target key end

     0   :  { %s11365_s0 = inlined_call_operand.vmem [shape: f32[2,16,128], index: 0, kind: input, shape index: {}]   ;;  %s11366_s1 = inlined_call_operand.vmem [shape: s32[2,32,1], index: 1, kind: input, shape index: {}]   ;;  %s11367_s2 = inlined_call_operand.vmem [shape: s32[2,1,32], index: 2, kind: input, shape index: {}]   ;;  %s11368_s3 = inlined_call_operand.vmem [shape: f32[2,32,8], index: 3, kind: input, shape index: {}]   ;;  %s11369_s4 = inlined_call_operand.vmem [shape: f32[2,16,1], index: 4, kind: input, shape index: {}]   ;;  %s11370_s5 = inlined_call_operand.vmem [shape: f32[8,256], index: 5, kind: input, shape index: {}]   ;;  %s11371_s6 = inlined_call_operand.vmem [shape: f32[1,256], index: 6, kind: input, shape index: {}]   ;;  %s11372_s7 = inlined_call_operand.vmem [shape: f32[128,128], index: 7, kind: input, shape index: {}]   ;;  %s11373_s8 = inlined_call_operand.vmem [shape: f32[1,128], index: 8, kind: input, shape index: {}]   ;;  %s11374_s9 = inlined_call_operand.hbm [shape: f32[128,128], index: 9, kind: input, shape index: {}]   ;;  %s11375_s10 = inlined_call_operand.vmem [shape: f32[1,128], index: 10, kind: input, shape index: {}]   ;;  %s11376_s11 = inlined_call_operand.hbm [shape: f32[128,128], index: 11, kind: input, shape index: {}]   ;;  %s11377_s12 = inlined_call_operand.vmem [shape: f32[1,128], index: 12, kind: input, shape index: {}]   ;;  %s11378_s13 = inlined_call_operand.hbm [shape: f32[2,16,128], index: 13, kind: output, shape index: {}]  }
   0x1   :  { %11455 = sst [smem:[#allocation36_spill]] %s11378_s13 }
   0x2   :  { %18 = vsyncpa [#allocation3], 0 }
   0x3   :  { %19 = vsyncpa [#allocation6], 0 }
   0x4   :  { %20 = vsyncpa [#allocation4], 0 }
   0x5   :  { %22 = vsyncpa [#allocation4 + $0x1], 0  ;;  %s9742_s25 = smov 0   ;;  %s9744_s26 = smov 0  }
   0x6   :  { %s9746_s27 = smov 0   ;;  %s9748_s28 = smov 0  }
   0x7 LB: > { %11456 = sst [smem:[#allocation11_spill]] %s9649_s25  ;;  %s9763_s29 = sadd.s32 4294967295, %s9661_s28   ;;  %s9661_s28 = sphi %s9748_s28, %s11576_s28   ;;  %s9657_s27 = sphi %s9746_s27, %s11578_s27   ;;  %s9653_s26 = sphi %s9744_s26, %s11580_s26   ;;  %s9649_s25 = sphi %s9742_s25, %s11579_s25  }
   0x8   : > { %11457 = sst [smem:[#allocation12_spill]] %s9657_s27  ;;  %s6898_s30 = sadd.s32 4294967294, %s9661_s28  }
   0x9   : > { %11458 = sst [smem:[#allocation13_spill]] %s9661_s28  ;;  %s9767_s14 = sadd.s32 1, %s9661_s28  }
   0xa   : > { %11459 = sst [smem:[#allocation14_spill]] %s9767_s14  ;;  %s333_s15 = sadd.s32 1, %s9657_s27 }
   0xb   : > { %s330_s16 = ssub.s32 %s9661_s28, %s9767_s14  ;;  %p343_p0 = scmp.ne.s32.totalorder %s9657_s27, %s9653_s26 }
   0xc   : > { %p331_p1 = scmp.eq.s32.totalorder %s330_s16, 0  ;;  %p344_p2 = scmp.eq.s32.totalorder %s9763_s29, 1 }
   0xd   : > { %p349_p3 = scmp.ne.s32.totalorder %s9653_s26, %s9649_s25  ;;  %p350_p4 = scmp.eq.s32.totalorder %s6898_s30, 1 }
   0xe   : > { %s9778_s17 = scalar_select %p331_p1, %s9657_s27, %s333_s15  }
   0xf   : > { %p9780_p5 = por %p344_p2, %p343_p0  ;;  %p9784_p6 = por %p350_p4, %p349_p3 }
  0x10   : > { %11460 = sst [smem:[#allocation15_spill]] %s9778_s17  ;;  %p6899_p7 = scmp.ge.s32.totalorder %s9661_s28, 1 }
  0x11   : > { %s11461_s18 = scalar_select %p9780_p5, 1, 0 }
  0x12   : > { %s11462_s19 = scalar_select %p9784_p6, 1, 0 }
  0x13   : > { %p357_p8 = scmp.lt.s32.totalorder %s9661_s28, 3  ;;  %p11383_p9 = scmp.eq.s32.totalorder %s9763_s29, 0 }
  0x14   : > { %11463 = sst [smem:[#allocation16_spill]] %s11462_s19  ;;  %s9663_s21 = smov [#allocation2]  }
  0x15   : > { %p9791_p10 = pnand %p6899_p7, %p357_p8  ;;  %s381_s22 = sshll.u32 %s9663_s21, 4  ;;  %s382_s22 = int_to_ptr.vmem [resolvable:$true] %s381_s22 }
  0x16   : > { %s9664_s24 = smov [#allocation5]   ;;  %s9535_s17 = scalar_lea.hbm %s11374_s9, 2048 }
  0x17   : > { %s11464_s20 = scalar_select %p9791_p10, 1, 0 }
  0x18   : > { %p9477_p11 = pneg %p9791_p10  ;;  %s397_s30 = sshll.u32 %s9664_s24, 4  ;;  %s9803_s30 = int_to_ptr.vmem [resolvable:$true] %s397_s30 }
  0x19   : > { %p9536_p13 = scmp.ne.s32.totalorder %s11374_s9, %s9535_s17  ;;  %p9542_p3 = scmp.lt.u32.totalorder %s9535_s17, %s11374_s9 }
  0x1a   : > { %p9799_p12 = pnand %p11383_p9, %p9477_p11 }
  0x1c   : > { %p9537_p0 = pneg %p9799_p12 }
  0x1e   : > { %p9538_p1 = pnand %p9537_p0, %p9536_p13 }
  0x20   : > { %p9539_p2 = pneg %p9538_p1 }
  0x22   : > { %p9544_p4 = pnand %p9542_p3, %p9539_p2 }
  0x24   : > { %9547 = shalt.err (!%p9544_p4)
}
  0x25   : > { %s9548_s24 = scalar_lea.vmem %s382_s22, 2048  ;;  %p9556_p9 = scmp.lt.s32.totalorder %s382_s22, %s382_s22 }
  0x26   : > { %p9549_p7 = scmp.ne.s32.totalorder %s382_s22, %s9548_s24  ;;  %p9557_p6 = scmp.lt.s32.totalorder %s9548_s24, %s9548_s24 }
  0x28   : > { %p9551_p8 = pnand %p9549_p7, %p9537_p0  ;;  %p9558_p5 = por %p9557_p6, %p9556_p9 }
  0x2a   : > { %p9552_p11 = pneg %p9551_p8 }
  0x2c   : > { %p9559_p10 = pnand %p9558_p5, %p9552_p11 }
  0x2e   : > { %9562 = shalt.err (!%p9559_p10)
}
  0x2f   : > { %s9665_s27 = smov 128   ;;  %s9666_s15 = smov 8  }
  0x30   : > { %9480 = dma.hbm_to_vmem [thread:$0]  (!%p9799_p12), %s11374_s9, 2048, %s382_s22, [#allocation3], %s9665_s27, %s9665_s27, %s9666_s15  }
  0x31   : > { %s9563_s21 = scalar_lea.hbm %s11376_s11, 2048 }
  0x32   : > { %p9564_p13 = scmp.ne.s32.totalorder %s11376_s11, %s9563_s21  ;;  %p9570_p9 = scmp.lt.u32.totalorder %s9563_s21, %s11376_s11 }
  0x34   : > { %p9566_p5 = pnand %p9564_p13, %p9537_p0 }
  0x36   : > { %p9567_p6 = pneg %p9566_p5 }
  0x38   : > { %p9572_p10 = pnand %p9570_p9, %p9567_p6 }
  0x3a   : > { %9575 = shalt.err (!%p9572_p10)
}
  0x3b   : > { %s9576_s22 = scalar_lea.vmem %s9803_s30, 2048  ;;  %p9584_p4 = scmp.lt.s32.totalorder %s9803_s30, %s9803_s30 }
  0x3c   : > { %p9577_p1 = scmp.ne.s32.totalorder %s9803_s30, %s9576_s22  ;;  %p9585_p7 = scmp.lt.s32.totalorder %s9576_s22, %s9576_s22 }
  0x3e   : > { %p9579_p2 = pnand %p9577_p1, %p9537_p0  ;;  %p9586_p8 = por %p9585_p7, %p9584_p4 }
  0x40   : > { %p9580_p3 = pneg %p9579_p2 }
  0x42   : > { %p9587_p11 = pnand %p9586_p8, %p9580_p3 }
  0x44   : > { %9590 = shalt.err (!%p9587_p11)
}
  0x45   : > { %9483 = dma.hbm_to_vmem [thread:$0]  (!%p9799_p12), %s11376_s11, 2048, %s9803_s30, [#allocation6], %s9665_s27, %s9665_s27, %s9666_s15  }
  0x46   : > { %p11466_p13 = scmp.ne.s32.totalorder %s11464_s20, 0 }
  0x48   : > { %454 = sbr.rel (%p11466_p13) target bundleno = 2908 (0xb5c), region = 72 }
  0x4f   : > { %p11467_p5 = scmp.eq.s32.totalorder %s9763_s29, 0 }
  0x51   : > { %9636 = dma.done.wait (%p11467_p5), [#allocation3], 2048   ;;  %p11468_p0 = pmov %p11467_p5 }
  0x53   : > { %9638 = vsyncadd (%p11468_p0), [#allocation3], 4294965248  ;;  %p11469_p6 = pmov %p11468_p0 }
  0x54   : > { %p11470_p9 = pmov %p11468_p0 }
  0x55   : > { %9640 = dma.done.wait (%p11469_p6), [#allocation6], 2048  }
  0x56   : > { %9642 = vsyncadd (%p11470_p9), [#allocation6], 4294965248  ;;  %p520_p10 = scmp.lt.s32.totalorder %s9763_s29, 1  ;;  %v9667_v0 = vmov 0   ;;  %v11401_v1 = vmov 0.0   ;;  %vm609_vm0 = vcmask 64512  }
  0x57   : > { %9534 = vset.pattern.permute.xlu1 %v9667_v0  ;;  %9533 = vset.pattern.permute.xlu0 %v9667_v0  ;;  %v596_v19 = vld [vmem:[%s11370_s5 + $0x8] sm:$0xff]  ;;  %v595_v20 = vld [vmem:[%s11370_s5] sm:$0xff]  ;;  %v552_v0 = vlaneseq  ;;  %vm1251_vm2 = vcmask 130048   ;;  %vm1856_vm7 = vcmask 261120   ;;  %s11570_s16 = sld [smem:[#allocation36_spill]]  ;;  %p11571_p1 = scmp.ne.s32.totalorder %s11461_s18, 0 }
  0x58   : > { %s9864_s28 = scalar_select %p520_p10, %s9763_s29, 1  ;;  %688 = vmatprep.mubr.f32.mxu0 %v11401_v1  ;;  %v9904_v23 = vand.u32 4294901760, %v596_v19  ;;  %v9906_v24 = vand.u32 4294901760, %v595_v20 }
  0x5a   : > { %s6985_s20 = sshll.u32 %s9864_s28, 5  ;;  %s6984_s19 = sshll.u32 %s9864_s28, 4  ;;  %623 = vmatprep.subr.mxu0 %v9904_v23  ;;  %v9917_v30 = vsub.f32 %v595_v20, %v9906_v24  ;;  %v734_v36 = vsub.f32 %v596_v19, %v9904_v23 }
  0x5b   : > { %s529_s27 = scalar_lea.vmem %s11366_s1, %s6985_s20  ;;  %s537_s17 = scalar_lea.vmem %s11368_s3, %s6985_s20  ;;  %625 = vmatpush1.msra.mxu0 %v9906_v24 }
  0x5c   : > { %v567_v2 = vld [vmem:[%s529_s27 + $0x10] sm:$0xff]  ;;  %v546_v3 = vld [vmem:[%s537_s17] sm:$0xff]  ;;  %s524_s24 = scalar_lea.vmem %s11365_s0, %s6984_s19  ;;  %v547_v4 = vld [vmem:[%s537_s17 + $0x8] sm:$0xff]  ;;  %s542_s25 = scalar_lea.vmem %s11369_s4, %s6984_s19  ;;  %v741_v39 = vand.u32 4294901760, %v9917_v30  ;;  %v735_v43 = vand.u32 4294901760, %v734_v36 }
  0x5d   : > { %578 = vperm.xlu1 %9534, %v567_v2   ;;  %v548_v5 = vld [vmem:[%s537_s17 + $0x10] sm:$0xff]  ;;  %v549_v6 = vld [vmem:[%s537_s17 + $0x18] sm:$0xff]  ;;  %v611_v7 = vsel %vm609_vm0, %v546_v3, 0  ;;  %v565_v8 = vld [vmem:[%s529_s27] sm:$0xff]  ;;  %v614_v13 = vsel %vm609_vm0, %v547_v4, 0  ;;  %v570_v2 = vand.u32 127, %v552_v0  ;;  %s532_s17 = scalar_lea.vmem %s11367_s2, %s9864_s28 }
  0x5e   : > { %v568_v9 = vld [vmem:[%s529_s27 + $0x18] sm:$0xff]  ;;  %v9879_v10 = vand.u32 4294901760, %v611_v7  ;;  %572 = vperm.xlu0 %9533, %v565_v8   ;;  %v9884_v11 = vld [vmem:[%s524_s24] sm:$0xff]  ;;  %v9886_v12 = vld [vmem:[%s524_s24 + $0x8] sm:$0xff]  ;;  %v617_v14 = vsel %vm609_vm0, %v548_v5, 0  ;;  %v620_v15 = vsel %vm609_vm0, %v549_v6, 0  ;;  %v742_v45 = vsub.f32 %v9917_v30, %v741_v39 }
  0x5f   : > { %v566_v16 = vld [vmem:[%s529_s27 + $0x8] sm:$0xff]  ;;  %v1265_v17 = vand.u32 4294901760, %v9884_v11  ;;  %v1268_v18 = vand.u32 4294901760, %v9886_v12  ;;  %v9902_v22 = vand.u32 4294901760, %v614_v13  ;;  %v9908_v25 = vand.u32 4294901760, %v617_v14  ;;  %v550_v33 = vld [vmem:[%s542_s25] sm:$0xff] }
  0x60   : > { %v9900_v21 = vsub.f32 %v611_v7, %v9879_v10  ;;  %v9910_v26 = vand.u32 4294901760, %v620_v15  ;;  %v551_v27 = vld [vmem:[%s542_s25 + $0x8] sm:$0xff]  ;;  %v736_v48 = vsub.f32 %v734_v36, %v735_v43  ;;  %v743_v50 = vand.u32 4294901760, %v742_v45  ;;  %s517_s20 = sand.u32 1, %s9653_s26  }
  0x61   : > { %581 = vperm.xlu1 %9534, %v568_v9   ;;  %v9912_v28 = vpack.c.bf16 %v1268_v18, %v1265_v17  ;;  %v9920_v31 = vsub.f32 %v614_v13, %v9902_v22  ;;  %v9923_v32 = vsub.f32 %v617_v14, %v9908_v25  ;;  %v1373_v40 = vsub.f32 %v9884_v11, %v1265_v17  ;;  %s6906_s23 = sshll.u32 %s517_s20, 4  ;;  %s11324_s24 = scalar_lea.sflag [#allocation4], %s517_s20 }
  0x62   : > { %v691_v29 = vand.u32 4294901760, %v9900_v21  ;;  %575 = vperm.xlu0 %9533, %v566_v16   ;;  %v9930_v35 = vsub.f32 %v620_v15, %v9910_v26  ;;  %v1380_v41 = vsub.f32 %v9886_v12, %v1268_v18  ;;  %v737_v51 = vand.u32 4294901760, %v736_v48  ;;  %s519_s27 = scalar_lea.vmem [#allocation7], %s6906_s23 }
  0x63   : > { %8538 = vmatprep.subr.bf16.mxu1 %v9912_v28  ;;  %v702_v37 = vand.u32 4294901760, %v9920_v31  ;;  %v713_v38 = vand.u32 4294901760, %v9923_v32  ;;  %v1374_v52 = vand.u32 4294901760, %v1373_v40  ;;  %s6769_s14 = sshll.u32 %s519_s27, 4  ;;  %s11317_s14 = int_to_ptr.vmem [resolvable:$true] %s6769_s14 }
  0x64   : > { %v692_v34 = vsub.f32 %v9900_v21, %v691_v29  ;;  %8540 = vmatpush3.bf16.msra.mxu1 %v9912_v28  ;;  %v724_v47 = vand.u32 4294901760, %v9930_v35  ;;  %v1381_v53 = vand.u32 4294901760, %v1380_v41  ;;  %738 = vmatprep.subr.mxu0 %v737_v51  ;;  %v9957_v62 = vpack.c.bf16 %v1380_v41, %v1373_v40  ;;  %v10155_v51 = vld [vmem:[%s11372_s7 + $0x10] sm:$0xff]  ;;  %s9591_s22 = scalar_lea.vmem %s11317_s14, 256 }
  0x65   : > { %4923 = vperm.xlu1 %9534, %v551_v27   ;;  %v703_v44 = vsub.f32 %v9920_v31, %v702_v37  ;;  %v714_v46 = vsub.f32 %v9923_v32, %v713_v38  ;;  %v1375_v56 = vsub.f32 %v1373_v40, %v1374_v52  ;;  %p9592_p12 = scmp.ne.s32.totalorder %s11317_s14, %s9591_s22 }
  0x66   : > { %v693_v42 = vand.u32 4294901760, %v692_v34  ;;  %4918 = vperm.xlu0 %9533, %v550_v33   ;;  %v725_v55 = vsub.f32 %v9930_v35, %v724_v47  ;;  %v1382_v57 = vsub.f32 %v1380_v41, %v1381_v53  ;;  %v9969_v63 = vpack.c.bf16 %v1381_v53, %v1374_v52 }
  0x67   : > { %v704_v49 = vand.u32 4294901760, %v703_v44  ;;  %v715_v54 = vand.u32 4294901760, %v714_v46  ;;  %v1376_v58 = vand.u32 4294901760, %v1375_v56  ;;  %v10115_v34 = vshrl.u32 %v552_v0, 7  ;;  %v10200_v0 = vld [vmem:[%s11372_s7 + $0x38] sm:$0xff]  ;;  %p9593_p2 = pnand %p9592_p12, %p11571_p1 }
  0x68   : > { %694 = vmatmul.mubr.f32.vlgmr.msra.gmra.mrb[0].mxu0 %v693_v42  ;;  %v1383_v59 = vand.u32 4294901760, %v1382_v57  ;;  %v726_v60 = vand.u32 4294901760, %v725_v55  ;;  %v11398_v55 = vand.u32 4294901760, %v10155_v51  ;;  %v10169_v57 = vld [vmem:[%s11372_s7 + $0x20] sm:$0xff] }
  0x69   : > { %699 = vmatprep.mubr.f32.mxu0 %v11401_v1  ;;  %744 = vmatpush1.msra.mxu0 %v743_v50  ;;  %11476 = vst [vmem:[#allocation22_spill] sm:$0xff] %v10115_v34  ;;  %v10150_v50 = vld [vmem:[%s11372_s7 + $0x8] sm:$0xff]  ;;  %p9594_p3 = pneg %p9593_p2 }
  0x6a   : > { %838 = vmatprep.subr.mxu0 %v734_v36  ;;  %v9951_v61 = vpack.c.bf16 %v1383_v59, %v1376_v58  ;;  %v11399_v53 = vand.u32 4294901760, %v10150_v50  ;;  %v10174_v58 = vld [vmem:[%s11372_s7 + $0x28] sm:$0xff] }
  0x6c   : > { %705 = vmatmul.mubr.f32.gmra.mrb[2].mxu0 %v704_v49  ;;  %8542 = vmatprep.subr.bf16.mxu1 %v9951_v61  ;;  %v10145_v49 = vld [vmem:[%s11372_s7] sm:$0xff] }
  0x6d   : > { %710 = vmatprep.mubr.f32.mxu0 %v11401_v1  ;;  %v11400_v52 = vand.u32 4294901760, %v10145_v49 }
  0x6f   : > { %v10180_v59 = vpack.c.bf16 %v11399_v53, %v11400_v52 }
  0x70   : > { %716 = vmatmul.mubr.f32.gmra.mrb[4].mxu0 %v715_v54  ;;  %v10162_v54 = vld [vmem:[%s11372_s7 + $0x18] sm:$0xff] }
  0x71   : > { %721 = vmatprep.mubr.f32.mxu0 %v11401_v1  ;;  %v11397_v56 = vand.u32 4294901760, %v10162_v54 }
  0x74   : > { %727 = vmatmul.mubr.f32.gmra.mrb[6].mxu0 %v726_v60  ;;  %v11396_v60 = vand.u32 4294901760, %v10169_v57 }
  0x75   : > { %807 = vmatprep.mubr.f32.mxu0 %v11401_v1 }
  0x78   : > { %809 = vmatmul.mubr.f32.vlgmr.msra.gmra.mrb[0].mxu0 %v9879_v10 }
  0x79   : > { %814 = vmatprep.mubr.f32.mxu0 %v11401_v1  ;;  %841 = vmatpush1.msra.mxu0 %v9917_v30 }
  0x7a   : > { %938 = vmatprep.subr.mxu0 %v9904_v23 }
  0x7c   : > { %816 = vmatmul.mubr.f32.gmra.mrb[2].mxu0 %v9902_v22 }
  0x7d   : > { %821 = vmatprep.mubr.f32.mxu0 %v11401_v1 }
  0x80   : > { %823 = vmatmul.mubr.f32.gmra.mrb[4].mxu0 %v9908_v25 }
  0x81   : > { %828 = vmatprep.mubr.f32.mxu0 %v11401_v1 }
  0x84   : > { %830 = vmatmul.mubr.f32.gmra.mrb[6].mxu0 %v9910_v26 }
  0x85   : > { %904 = vmatprep.mubr.f32.mxu0 %v11401_v1 }
  0x88   : > { %907 = vmatmul.mubr.f32.vlgmr.msra.gmra.mrb[0].mxu0 %v9900_v21 }
  0x89   : > { %912 = vmatprep.mubr.f32.mxu0 %v11401_v1  ;;  %940 = vmatpush1.msra.mxu0 %v9906_v24 }
  0x8a   : > { %1043 = vmatprep.subr.mxu0 %v735_v43 }
  0x8c   : > { %915 = vmatmul.mubr.f32.gmra.mrb[2].mxu0 %v9920_v31 }
  0x8d   : > { %920 = vmatprep.mubr.f32.mxu0 %v11401_v1 }
  0x90   : > { %923 = vmatmul.mubr.f32.gmra.mrb[4].mxu0 %v9923_v32 }
  0x91   : > { %928 = vmatprep.mubr.f32.mxu0 %v11401_v1 }
  0x94   : > { %931 = vmatmul.mubr.f32.gmra.mrb[6].mxu0 %v9930_v35 }
  0x95   : > { %1003 = vmatprep.mubr.f32.mxu0 %v11401_v1 }
  0x98   : > { %1007 = vmatmul.mubr.f32.vlgmr.msra.gmra.mrb[0].mxu0 %v691_v29 }
  0x99   : > { %1012 = vmatprep.mubr.f32.mxu0 %v11401_v1  ;;  %1047 = vmatpush1.msra.mxu0 %v741_v39 }
  0x9a   : > { %1140 = vmatprep.subr.mxu0 %v9904_v23 }
  0x9c   : > { %1016 = vmatmul.mubr.f32.gmra.mrb[2].mxu0 %v702_v37 }
  0x9d   : > { %1021 = vmatprep.mubr.f32.mxu0 %v11401_v1 }
  0xa0   : > { %1025 = vmatmul.mubr.f32.gmra.mrb[4].mxu0 %v713_v38 }
  0xa1   : > { %1030 = vmatprep.mubr.f32.mxu0 %v11401_v1 }
  0xa4   : > { %1034 = vmatmul.mubr.f32.gmra.mrb[6].mxu0 %v724_v47 }
  0xa5   : > { %1110 = vmatprep.mubr.f32.mxu0 %v11401_v1 }
  0xa8   : > { %1112 = vmatmul.mubr.f32.vlgmr.msra.gmra.mrb[0].mxu0 %v9879_v10 }
  0xa9   : > { %1117 = vmatprep.mubr.f32.mxu0 %v11401_v1  ;;  %1142 = vmatpush1.msra.mxu0 %v9906_v24 }
  0xaa   : > { %8706 = vmatprep.subr.bf16.mxu0 %v10180_v59 }
  0xac   : > { %1119 = vmatmul.mubr.f32.gmra.mrb[2].mxu0 %v9902_v22 }
  0xad   : > { %1124 = vmatprep.mubr.f32.mxu0 %v11401_v1 }
  0xb0   : > { %1126 = vmatmul.mubr.f32.gmra.mrb[4].mxu0 %v9908_v25 }
  0xb1   : > { %1131 = vmatprep.mubr.f32.mxu0 %v11401_v1 }
  0xb4   : > { %1133 = vmatmul.mubr.f32.gmra.mrb[6].mxu0 %v9910_v26 }
  0xb5   : > { %1205 = vmatprep.mubr.f32.mxu0 %v11401_v1 }
  0xb8   : > { %1207 = vmatmul.mubr.f32.vlgmr.msra.gmra.mrb[0].mxu0 %v9879_v10 }
  0xb9   : > { %1212 = vmatprep.mubr.f32.mxu0 %v11401_v1  ;;  %8708 = vmatpush3.bf16.msra.mxu0 %v10180_v59 }
  0xbc   : > { %1214 = vmatmul.mubr.f32.gmra.mrb[2].mxu0 %v9902_v22 }
  0xbd   : > { %1219 = vmatprep.mubr.f32.mxu0 %v11401_v1 }
  0xc0   : > { %1221 = vmatmul.mubr.f32.gmra.mrb[4].mxu0 %v9908_v25 }
  0xc1   : > { %1226 = vmatprep.mubr.f32.mxu0 %v11401_v1 }
  0xc4   : > { %1228 = vmatmul.mubr.f32.gmra.mrb[6].mxu0 %v9910_v26 }
  0xdc   : > { %v579_v3 = vpop.permute.xlu1 %578 }
  0xdd   : > { %vm585_vm1 = vcmp.eq.s32.totalorder %v570_v2, %v579_v3  ;;  %v573_v5 = vpop.permute.xlu0 %572 }
  0xde   : > { %v10008_v4 = vsel %vm585_vm1, 1.0, %v11401_v1  ;;  %vm583_vm3 = vcmp.eq.s32.totalorder %v570_v2, %v573_v5  ;;  %v11391_v5 = vand.u32 4294901760, %v10200_v0 }
  0xdf   : > { %v1259_v6 = vsel %vm1251_vm2, %v10008_v4, 0  ;;  %v10013_v7 = vsel %vm583_vm3, 1.0, %v11401_v1 }
  0xe0   : > { %v582_v8 = vpop.permute.xlu1 %581  ;;  %v1253_v9 = vsel %vm1251_vm2, %v10013_v7, 0  ;;  %v10017_v10 = vsub.f32 %v1259_v6, %v1259_v6  ;;  %v10215_v6 = vld [vmem:[%s11372_s7 + $0x40] sm:$0xff] }
  0xe1   : > { %vm586_vm4 = vcmp.eq.s32.totalorder %v570_v2, %v582_v8  ;;  %v576_v14 = vpop.permute.xlu0 %575  ;;  %v10022_v15 = vsub.f32 %v1253_v9, %v1253_v9  ;;  %v10220_v8 = vld [vmem:[%s11372_s7 + $0x48] sm:$0xff] }
  0xe2   : > { %v10020_v13 = vsel %vm586_vm4, 1.0, %v11401_v1  ;;  %vm584_vm5 = vcmp.eq.s32.totalorder %v570_v2, %v576_v14  ;;  %v10037_v21 = vand.u32 4294901760, %v10017_v10  ;;  %v11390_v14 = vand.u32 4294901760, %v10215_v6 }
  0xe3   : > { %v1262_v16 = vsel %vm1251_vm2, %v10020_v13, 0  ;;  %v10027_v17 = vsel %vm584_vm5, 1.0, %v11401_v1  ;;  %v10030_v18 = vand.u32 4294901760, %v10022_v15 }
  0xe4   : > { %v10032_v19 = vsub.f32 %v1262_v16, %v1262_v16  ;;  %v1256_v20 = vsel %vm1251_vm2, %v10027_v17, 0  ;;  %11473 = vst [vmem:[#allocation19_spill] sm:$0xff] %v10037_v21  ;;  %v1354_v27 = vsub.f32 %v10017_v10, %v10037_v21  ;;  %v11389_v16 = vand.u32 4294901760, %v10220_v8 }
  0xe5   : > { %11471 = vst [vmem:[#allocation17_spill] sm:$0xff] %v10030_v18  ;;  %v1334_v22 = vsub.f32 %v10022_v15, %v10030_v18  ;;  %v10041_v23 = vsub.f32 %v1256_v20, %v1256_v20  ;;  %v10235_v20 = vld [vmem:[%s11372_s7 + $0x50] sm:$0xff] }
  0xe6   : > { %11472 = vst [vmem:[#allocation18_spill] sm:$0xff] %v10032_v19  ;;  %v10049_v26 = vand.u32 4294901760, %v10032_v19  ;;  %v10060_v32 = vand.u32 4294901760, %v1354_v27  ;;  %v10247_v27 = vpack.c.bf16 %v11389_v16, %v11390_v14  ;;  %v10264_v16 = vld [vmem:[%s11371_s6] sm:$0x3] }
  0xe7   : > { %v10043_v24 = vand.u32 4294901760, %v1334_v22  ;;  %v10046_v25 = vand.u32 4294901760, %v10041_v23  ;;  %v10240_v22 = vld [vmem:[%s11372_s7 + $0x58] sm:$0xff]  ;;  %11485 = vst [vmem:[#allocation31_spill] sm:$0xff] %v10264_v16 }
  0xe8   : > { %11475 = vst [vmem:[#allocation21_spill] sm:$0xff] %v10049_v26  ;;  %v1364_v31 = vsub.f32 %v10032_v19, %v10049_v26 }
  0xe9   : > { %11474 = vst [vmem:[#allocation20_spill] sm:$0xff] %v10046_v25  ;;  %7533 = vmatprep.mubr.f32.mxu1 %v10043_v24  ;;  %v1344_v29 = vsub.f32 %v10041_v23, %v10046_v25 }
  0xea   : > { %v10065_v33 = vand.u32 4294901760, %v1364_v31  ;;  %v11394_v31 = vand.u32 4294901760, %v10240_v22 }
  0xeb   : > { %v10056_v30 = vand.u32 4294901760, %v1344_v29  ;;  %v11395_v29 = vand.u32 4294901760, %v10235_v20 }
  0xed   : > { %7534 = vmatmul.mubr.f32.vlgmr.msra.gmra.mrb[0].mxu1 %v10056_v30 }
  0xee   : > { %7536 = vmatprep.mubr.f32.mxu1 %v10060_v32  ;;  %8544 = vmatpush3.bf16.msra.mxu1 %v9951_v61  ;;  %v11393_v61 = vand.u32 4294901760, %v10174_v58 }
  0xef   : > { %8546 = vmatprep.subr.bf16.mxu1 %v9957_v62 }
  0xf0   : > { %v10207_v2 = vpack.c.bf16 %v11393_v61, %v11396_v60 }
  0xf1   : > { %7537 = vmatmul.mubr.f32.gmra.mrb[2].mxu1 %v10065_v33 }
  0xf2   : > { %7543 = vmatprep.mubr.msk.f32.mxu1 %vm1251_vm2, %v10013_v7 }
  0xf5   : > { %7544 = vmatmul.mubr.msk.f32.vlgmr.msra.gmra.mrb[4].mxu1 %vm1251_vm2, %v10027_v17 }
  0xf6   : > { %7546 = vmatprep.mubr.msk.f32.mxu1 %vm1251_vm2, %v10008_v4  ;;  %8548 = vmatpush3.bf16.msra.mxu1 %v9957_v62  ;;  %v10188_v62 = vpack.c.bf16 %v11397_v56, %v11398_v55 }
  0xf7   : > { %8550 = vmatprep.subr.bf16.mxu1 %v9912_v28 }
  0xf8   : > { %8710 = vmatprep.subr.bf16.mxu0 %v10188_v62 }
  0xf9   : > { %7547 = vmatmul.mubr.msk.f32.gmra.mrb[6].mxu1 %vm1251_vm2, %v10020_v13  ;;  %8712 = vmatpush3.bf16.msra.mxu0 %v10188_v62 }
  0xfa   : > { %7553 = vmatprep.mubr.f32.mxu1 %v10022_v15  ;;  %8714 = vmatprep.subr.bf16.mxu0 %v10207_v2 }
  0xfd   : > { %7554 = vmatmul.mubr.f32.vlgmr.msra.gmra.mrb[8].mxu1 %v10041_v23  ;;  %8716 = vmatpush3.bf16.msra.mxu0 %v10207_v2 }
  0xfe   : > { %7556 = vmatprep.mubr.f32.mxu1 %v10017_v10  ;;  %8552 = vmatpush3.bf16.msra.mxu1 %v9912_v28 }
  0xff   : > { %8554 = vmatprep.subr.bf16.mxu1 %v9969_v63 }
 0x101   : > { %7557 = vmatmul.mubr.f32.gmra.mrb[10].mxu1 %v10032_v19 }
 0x102   : > { %7563 = vmatprep.mubr.f32.mxu1 %v10030_v18 }
 0x105   : > { %7564 = vmatmul.mubr.f32.vlgmr.msra.gmra.mrb[12].mxu1 %v10046_v25 }
 0x106   : > { %7566 = vmatprep.mubr.f32.mxu1 %v10037_v21  ;;  %8556 = vmatpush3.bf16.msra.mxu1 %v9969_v63  ;;  %v10195_v63 = vld [vmem:[%s11372_s7 + $0x30] sm:$0xff] }
 0x107   : > { %8558 = vmatprep.subr.bf16.mxu1 %v9912_v28  ;;  %v11392_v3 = vand.u32 4294901760, %v10195_v63 }
 0x109   : > { %7567 = vmatmul.mubr.f32.gmra.mrb[14].mxu1 %v10049_v26  ;;  %v10227_v9 = vpack.c.bf16 %v11391_v5, %v11392_v3 }
 0x10a   : > { %7573 = vmatprep.mubr.msk.f32.mxu1 %vm1251_vm2, %v10013_v7 }
 0x10b   : > { %8718 = vmatprep.subr.bf16.mxu0 %v10227_v9 }
 0x10c   : > { %8720 = vmatpush3.bf16.msra.mxu0 %v10227_v9 }
 0x10d   : > { %7574 = vmatmul.mubr.msk.f32.vlgmr.msra.gmra.mrb[16].mxu1 %vm1251_vm2, %v10027_v17  ;;  %8722 = vmatprep.subr.bf16.mxu0 %v10247_v27 }
 0x10e   : > { %7576 = vmatprep.mubr.msk.f32.mxu1 %vm1251_vm2, %v10008_v4  ;;  %8560 = vmatpush3.bf16.msra.mxu1 %v9912_v28  ;;  %v10112_v28 = vld [vmem:[%s532_s17] ss:$0 sm:$0xff]  ;;  %s6988_s17 = sshll.u32 %s9763_s29, 8  ;;  %s9669_s29 = smov [#allocation7]  }
 0x10f   : > { %vm559_vm6 = vcmp.eq.s32.totalorder %v10115_v34, %v10112_v28  ;;  %s11322_s21 = scalar_lea.hbm %s11570_s16, %s6988_s17  ;;  %s9595_s13 = sshll.u32 %s9669_s29, 4  ;;  %s9596_s13 = int_to_ptr.vmem [resolvable:$false] %s9595_s13 }
 0x110   : > { %v10120_v35 = vsel %vm559_vm6, 1.0, %v11401_v1  ;;  %8724 = vmatpush3.bf16.msra.mxu0 %v10247_v27  ;;  %s9597_s25 = scalar_lea.vmem %s9596_s13, 512  ;;  %p9598_p4 = scmp.lt.s32.totalorder %s11317_s14, %s9596_s13 }
 0x111   : > { %7577 = vmatmul.mubr.msk.f32.gmra.mrb[18].mxu1 %vm1251_vm2, %v10020_v13  ;;  %11477 = vst [vmem:[#allocation23_spill] sm:$0xff] %v10120_v35  ;;  %v1858_v36 = vsel %vm1856_vm7, %v10120_v35, 0  ;;  %p9599_p7 = scmp.lt.s32.totalorder %s9597_s25, %s9591_s22 }
 0x112   : > { %7583 = vmatprep.mubr.msk.f32.mxu1 %vm1251_vm2, %v10013_v7  ;;  %v10124_v37 = vsub.f32 %v1858_v36, %v1858_v36  ;;  %v10257_v36 = vpack.c.bf16 %v11394_v31, %v11395_v29 }
 0x113   : > { %p9600_p8 = por %p9599_p7, %p9598_p4 }
 0x114   : > { %11478 = vst [vmem:[#allocation24_spill] sm:$0xff] %v10124_v37  ;;  %v10127_v38 = vand.u32 4294901760, %v10124_v37  ;;  %8726 = vmatprep.subr.bf16.mxu0 %v10257_v36 }
 0x115   : > { %7584 = vmatmul.mubr.msk.f32.vlgmr.msra.gmra.mrb[20].mxu1 %vm1251_vm2, %v10027_v17  ;;  %8728 = vmatpush3.bf16.msra.mxu0 %v10257_v36  ;;  %p9601_p11 = pnand %p9600_p8, %p9594_p3 }
 0x116   : > { %7586 = vmatprep.mubr.msk.f32.mxu1 %vm1251_vm2, %v10008_v4  ;;  %11479 = vst [vmem:[#allocation25_spill] sm:$0xff] %v10127_v38  ;;  %v1935_v39 = vsub.f32 %v10124_v37, %v10127_v38 }
 0x118   : > { %v10131_v40 = vand.u32 4294901760, %v1935_v39  ;;  %v601_v39 = vsub.s32 0, %v10115_v34 }
 0x119   : > { %7587 = vmatmul.mubr.msk.f32.gmra.mrb[22].mxu1 %vm1251_vm2, %v10020_v13 }
 0x11a   : > { %11480 = vst [vmem:[#allocation26_spill] sm:$0xff] %v10131_v40  ;;  %7597 = vmatprep.mubr.f32.mxu1 %v10131_v40  ;;  %v602_v14 = vrot.slane %v10264_v16, %v601_v39 }
 0x18b   : > { %v1208_v41 = vpop.f32.mrb[0].mxu0 }
 0x18c   : > { %v10134_v42 = vpop.f32.mrb[1].mxu0  ;;  %v9331_v3 = vadd.f32 %v1208_v41, %v602_v14 }
 0x18d   : > { %11481 = vst [vmem:[#allocation27_spill] sm:$0xff] %v10134_v42 }
 0x18f   : > { %v1215_v43 = vpop.f32.mrb[2].mxu0 }
 0x190   : > { %v10136_v44 = vpop.f32.mrb[3].mxu0  ;;  %v9333_v5 = vadd.f32 %v1215_v43, %v602_v14 }
 0x191   : > { %11482 = vst [vmem:[#allocation28_spill] sm:$0xff] %v10136_v44 }
 0x193   : > { %v1222_v45 = vpop.f32.mrb[4].mxu0 }
 0x194   : > { %v10138_v46 = vpop.f32.mrb[5].mxu0  ;;  %v9335_v55 = vadd.f32 %v1222_v45, %v602_v14 }
 0x195   : > { %11483 = vst [vmem:[#allocation29_spill] sm:$0xff] %v10138_v46 }
 0x197   : > { %v1229_v47 = vpop.f32.mrb[6].mxu0 }
 0x198   : > { %v10140_v48 = vpop.f32.mrb[7].mxu0  ;;  %v9337_v56 = vadd.f32 %v1229_v47, %v602_v14 }
 0x199   : > { %11484 = vst [vmem:[#allocation30_spill] sm:$0xff] %v10140_v48 }
 0x1c0   : > { %v7535_v61 = vpop.f32.mrb[0].mxu1 }
 0x1c1   : > { %v1348_v31 = vadd.f32 %v9333_v5, %v7535_v61  ;;  %v1337_v29 = vpop.f32.mrb[1].mxu1 }
 0x1c2   : > { %v1338_v60 = vadd.f32 %v9331_v3, %v1337_v29 }
 0x1c4   : > { %v7538_v53 = vpop.f32.mrb[2].mxu1 }
 0x1c5   : > { %v1368_v52 = vadd.f32 %v9337_v56, %v7538_v53  ;;  %v1357_v1 = vpop.f32.mrb[3].mxu1 }
 0x1c6   : > { %v1358_v46 = vadd.f32 %v9335_v55, %v1357_v1 }
 0x1c8   : > { %v7545_v42 = vpop.f32.mrb[4].mxu1 }
 0x1c9   : > { %v1455_v48 = vadd.f32 %v7545_v42, %v1348_v31  ;;  %v1448_v44 = vpop.f32.mrb[5].mxu1  ;;  %v554_v42 = vadd.s32 8, %v10115_v34 }
 0x1ca   : > { %v1449_v40 = vadd.f32 %v1448_v44, %v1338_v60 }
 0x1cb   : > { %vm560_vm8 = vcmp.eq.s32.totalorder %v554_v42, %v10112_v28 }
 0x1cc   : > { %v7548_v26 = vpop.f32.mrb[6].mxu1 }
 0x1cd   : > { %v1467_v39 = vadd.f32 %v7548_v26, %v1368_v52  ;;  %v1460_v16 = vpop.f32.mrb[7].mxu1 }
 0x1ce   : > { %v1461_v21 = vadd.f32 %v1460_v16, %v1358_v46 }
 0x1d0   : > { %v7555_v43 = vpop.f32.mrb[8].mxu1 }
 0x1d1   : > { %v1550_v41 = vadd.f32 %v7555_v43, %v1455_v48  ;;  %v1542_v25 = vpop.f32.mrb[9].mxu1 }
 0x1d2   : > { %v1543_v61 = vadd.f32 %v1542_v25, %v1449_v40  ;;  %v11486_v40 = vmov 0.0  }
 0x1d3   : > { %v10272_v16 = vsel %vm560_vm8, 1.0, %v11486_v40 }
 0x1d4   : > { %v7558_v5 = vpop.f32.mrb[10].mxu1  ;;  %11487 = vst [vmem:[#allocation32_spill] sm:$0xff] %v10272_v16  ;;  %v1861_v43 = vsel %vm1856_vm7, %v10272_v16, 0 }
 0x1d5   : > { %v1564_v3 = vadd.f32 %v7558_v5, %v1467_v39  ;;  %v1556_v47 = vpop.f32.mrb[11].mxu1 }
 0x1d6   : > { %v1557_v45 = vadd.f32 %v1556_v47, %v1461_v21  ;;  %v10276_v47 = vsub.f32 %v1861_v43, %v1861_v43 }
 0x1d8   : > { %v7565_v14 = vpop.f32.mrb[12].mxu1  ;;  %11488 = vst [vmem:[#allocation33_spill] sm:$0xff] %v10276_v47 }
 0x1d9   : > { %v1647_v53 = vadd.f32 %v7565_v14, %v1550_v41  ;;  %v1638_v56 = vpop.f32.mrb[13].mxu1 }
 0x1da   : > { %v1639_v1 = vadd.f32 %v1638_v56, %v1543_v61 }
 0x1dc   : > { %v7568_v55 = vpop.f32.mrb[14].mxu1 }
 0x1dd   : > { %v1663_v44 = vadd.f32 %v7568_v55, %v1564_v3  ;;  %v1654_v60 = vpop.f32.mrb[15].mxu1 }
 0x1de   : > { %v1655_v26 = vadd.f32 %v1654_v60, %v1557_v45 }
 0x1e0   : > { %v7575_v52 = vpop.f32.mrb[16].mxu1 }
 0x1e1   : > { %v1746_v46 = vadd.f32 %v7575_v52, %v1647_v53  ;;  %v1739_v48 = vpop.f32.mrb[17].mxu1 }
 0x1e2   : > { %v1740_v25 = vadd.f32 %v1739_v48, %v1639_v1 }
 0x1e4   : > { %v7578_v21 = vpop.f32.mrb[18].mxu1 }
 0x1e5   : > { %v1758_v29 = vadd.f32 %v7578_v21, %v1663_v44  ;;  %v1751_v31 = vpop.f32.mrb[19].mxu1  ;;  %v10279_v44 = vand.u32 4294901760, %v10276_v47 }
 0x1e6   : > { %v1752_v39 = vadd.f32 %v1751_v31, %v1655_v26 }
 0x1e7   : > { %11489 = vst [vmem:[#allocation34_spill] sm:$0xff] %v10279_v44  ;;  %v1945_v43 = vsub.f32 %v10276_v47, %v10279_v44 }
 0x1e8   : > { %v7585_v41 = vpop.f32.mrb[20].mxu1 }
 0x1e9   : > { %v1837_v61 = vadd.f32 %v7585_v41, %v1746_v46  ;;  %v1830_v5 = vpop.f32.mrb[21].mxu1 }
 0x1ea   : > { %v1831_v3 = vadd.f32 %v1830_v5, %v1740_v25 }
 0x1eb   : > { %v1853_v28 = vmax.f32 %v1837_v61, 0.0 }
 0x1ec   : > { %v1852_v45 = vmax.f32 %v1831_v3, 0.0  ;;  %v7588_v14 = vpop.f32.mrb[22].mxu1 }
 0x1ed   : > { %v1867_v53 = vand.u32 4294901760, %v1853_v28  ;;  %v1849_v56 = vadd.f32 %v7588_v14, %v1758_v29  ;;  %v1842_v1 = vpop.f32.mrb[23].mxu1 }
 0x1ee   : > { %v1864_v55 = vand.u32 4294901760, %v1852_v45  ;;  %v1843_v42 = vadd.f32 %v1842_v1, %v1752_v39 }
 0x1ef   : > { %v1961_v60 = vsub.f32 %v1853_v28, %v1867_v53  ;;  %v1855_v26 = vmax.f32 %v1849_v56, 0.0  ;;  %v10283_v56 = vand.u32 4294901760, %v1945_v43 }
 0x1f0   : > { %v8561_v52 = vpack.c.bf16 %v1867_v53, %v1864_v55  ;;  %v1954_v48 = vsub.f32 %v1852_v45, %v1864_v55  ;;  %v1854_v46 = vmax.f32 %v1843_v42, 0.0 }
 0x1f1   : > { %v1962_v40 = vand.u32 4294901760, %v1961_v60  ;;  %v1873_v25 = vand.u32 4294901760, %v1855_v26  ;;  %11490 = vst [vmem:[#allocation35_spill] sm:$0xff] %v10283_v56 }
 0x1f2   : > { %v1955_v21 = vand.u32 4294901760, %v1954_v48  ;;  %v1870_v31 = vand.u32 4294901760, %v1854_v46  ;;  %8562 = vmatprep.subr.bf16.mxu1 %v8561_v52  ;;  %v8577_v29 = vpack.c.bf16 %v1961_v60, %v1954_v48 }
 0x1f3   : > { %v1975_v41 = vsub.f32 %v1855_v26, %v1873_v25  ;;  %8564 = vmatpush3.bf16.msra.mxu1 %v8561_v52  ;;  %v1963_v39 = vsub.f32 %v1961_v60, %v1962_v40 }
 0x1f4   : > { %v8565_v61 = vpack.c.bf16 %v1873_v25, %v1870_v31  ;;  %v1968_v5 = vsub.f32 %v1854_v46, %v1870_v31  ;;  %v1956_v3 = vsub.f32 %v1954_v48, %v1955_v21  ;;  %v8593_v28 = vpack.c.bf16 %v1962_v40, %v1955_v21  ;;  %v1248_v40 = vld [vmem:[%s11372_s7 + $0x70] sm:$0xff]  ;;  %v1249_v25 = vld [vmem:[%s11372_s7 + $0x78] sm:$0xff] }
 0x1f5   : > { %v1976_v14 = vand.u32 4294901760, %v1975_v41  ;;  %v1964_v53 = vand.u32 4294901760, %v1963_v39  ;;  %v2442_v21 = vand.u32 4294901760, %v1248_v40  ;;  %v2445_v31 = vand.u32 4294901760, %v1249_v25 }
 0x1f6   : > { %v1969_v45 = vand.u32 4294901760, %v1968_v5  ;;  %8566 = vmatprep.subr.bf16.mxu1 %v8565_v61  ;;  %v1957_v1 = vand.u32 4294901760, %v1956_v3  ;;  %v8581_v55 = vpack.c.bf16 %v1975_v41, %v1968_v5  ;;  %v11492_v39 = vand.u32 4294901760, %v10150_v50 }
 0x1f7   : > { %8568 = vmatpush3.bf16.msra.mxu1 %v8565_v61  ;;  %v1977_v42 = vsub.f32 %v1975_v41, %v1976_v14  ;;  %v10332_v43 = vpack.c.bf16 %v2445_v31, %v2442_v21 }
 0x1f8   : > { %v8569_v34 = vpack.c.bf16 %v1964_v53, %v1957_v1  ;;  %v1970_v18 = vsub.f32 %v1968_v5, %v1969_v45  ;;  %v8597_v19 = vpack.c.bf16 %v1976_v14, %v1969_v45 }
 0x1f9   : > { %v1978_v26 = vand.u32 4294901760, %v1977_v42 }
 0x1fa   : > { %7598 = vmatmul.mubr.f32.vlgmr.msra.gmra.mrb[24].mxu1 %v10283_v56  ;;  %8570 = vmatprep.subr.bf16.mxu1 %v8569_v34  ;;  %v1971_v60 = vand.u32 4294901760, %v1970_v18  ;;  %v1246_v18 = vld [vmem:[%s11372_s7 + $0x60] sm:$0xff] }
 0x1fb   : > { %8572 = vmatpush3.bf16.msra.mxu1 %v8569_v34  ;;  %7608 = vmatprep.mubr.msk.f32.mxu1 %vm1856_vm7, %v10120_v35  ;;  %v2436_v34 = vand.u32 4294901760, %v1246_v18 }
 0x1fc   : > { %v8573_v48 = vpack.c.bf16 %v1978_v26, %v1971_v60 }
 0x1fe   : > { %8574 = vmatprep.subr.bf16.mxu1 %v8573_v48 }
 0x1ff   : > { %8576 = vmatpush3.bf16.msra.mxu1 %v8573_v48  ;;  %v2600_v48 = vsub.f32 %v1248_v40, %v2442_v21  ;;  %v11493_v21 = vand.u32 4294901760, %v10155_v51 }
 0x200   : > { %8578 = vmatprep.subr.bf16.mxu1 %v8577_v29 }
 0x202   : > { %7609 = vmatmul.mubr.msk.f32.vlgmr.msra.gmra.mrb[24].mxu1 %vm1856_vm7, %v10272_v16 }
 0x203   : > { %8580 = vmatpush3.bf16.msra.mxu1 %v8577_v29  ;;  %7619 = vmatprep.mubr.f32.mxu1 %v10124_v37  ;;  %v11491_v29 = vand.u32 4294901760, %v10145_v49 }
 0x204   : > { %8582 = vmatprep.subr.bf16.mxu1 %v8581_v55 }
 0x205   : > { %v2502_v41 = vsub.f32 %v10145_v49, %v11491_v29  ;;  %v2607_v29 = vsub.f32 %v1249_v25, %v2445_v31  ;;  %v11494_v31 = vand.u32 4294901760, %v10162_v54 }
 0x207   : > { %8584 = vmatpush3.bf16.msra.mxu1 %v8581_v55  ;;  %v2503_v5 = vand.u32 4294901760, %v2502_v41  ;;  %v10362_v25 = vpack.c.bf16 %v2607_v29, %v2600_v48 }
 0x208   : > { %8586 = vmatprep.subr.bf16.mxu1 %v8561_v52 }
 0x209   : > { %v2504_v14 = vsub.f32 %v2502_v41, %v2503_v5 }
 0x20a   : > { %7620 = vmatmul.mubr.f32.vlgmr.msra.gmra.mrb[24].mxu1 %v10276_v47 }
 0x20b   : > { %8588 = vmatpush3.bf16.msra.mxu1 %v8561_v52  ;;  %7630 = vmatprep.mubr.f32.mxu1 %v10127_v38  ;;  %v2505_v49 = vand.u32 4294901760, %v2504_v14  ;;  %v2608_v38 = vand.u32 4294901760, %v2607_v29 }
 0x20c   : > { %8590 = vmatprep.subr.bf16.mxu1 %v8565_v61 }
 0x20f   : > { %8592 = vmatpush3.bf16.msra.mxu1 %v8565_v61 }
 0x210   : > { %8594 = vmatprep.subr.bf16.mxu1 %v8593_v28 }
 0x212   : > { %7631 = vmatmul.mubr.f32.vlgmr.msra.gmra.mrb[24].mxu1 %v10279_v44 }
 0x213   : > { %8596 = vmatpush3.bf16.msra.mxu1 %v8593_v28  ;;  %7641 = vmatprep.mubr.msk.f32.mxu1 %vm1856_vm7, %v10120_v35 }
 0x214   : > { %8598 = vmatprep.subr.bf16.mxu1 %v8597_v19 }
 0x217   : > { %8600 = vmatpush3.bf16.msra.mxu1 %v8597_v19  ;;  %v1247_v19 = vld [vmem:[%s11372_s7 + $0x68] sm:$0xff] }
 0x218   : > { %8602 = vmatprep.subr.bf16.mxu1 %v8561_v52 }
 0x21a   : > { %7642 = vmatmul.mubr.msk.f32.vlgmr.msra.gmra.mrb[24].mxu1 %vm1856_vm7, %v10272_v16 }
 0x21b   : > { %8604 = vmatpush3.bf16.msra.mxu1 %v8561_v52  ;;  %7652 = vmatprep.mubr.msk.f32.mxu1 %vm1856_vm7, %v10120_v35  ;;  %v2439_v52 = vand.u32 4294901760, %v1247_v19 }
 0x21c   : > { %8606 = vmatprep.subr.bf16.mxu1 %v8565_v61 }
 0x21d   : > { %v10320_v46 = vpack.c.bf16 %v2439_v52, %v2436_v34  ;;  %v2593_v55 = vsub.f32 %v1247_v19, %v2439_v52 }
 0x21f   : > { %8608 = vmatpush3.bf16.msra.mxu1 %v8565_v61  ;;  %8730 = vmatprep.subr.bf16.mxu0 %v10320_v46  ;;  %v2509_v61 = vsub.f32 %v10150_v50, %v11492_v39  ;;  %v2586_v50 = vsub.f32 %v1246_v18, %v2436_v34  ;;  %v2594_v26 = vand.u32 4294901760, %v2593_v55 }
 0x220   : > { %8610 = vmatprep.subr.bf16.mxu1 %v10180_v59  ;;  %8732 = vmatpush3.bf16.msra.mxu0 %v10320_v46 }
 0x221   : > { %8734 = vmatprep.subr.bf16.mxu0 %v10332_v43  ;;  %v2510_v3 = vand.u32 4294901760, %v2509_v61  ;;  %v2587_v42 = vand.u32 4294901760, %v2586_v50  ;;  %v2595_v44 = vsub.f32 %v2593_v55, %v2594_v26  ;;  %v10358_v52 = vpack.c.bf16 %v2509_v61, %v2502_v41 }
 0x222   : > { %7653 = vmatmul.mubr.msk.f32.vlgmr.msra.gmra.mrb[24].mxu1 %vm1856_vm7, %v10272_v16  ;;  %v10360_v40 = vpack.c.bf16 %v2593_v55, %v2586_v50  ;;  %v11495_v41 = vand.u32 4294901760, %v10169_v57 }
 0x223   : > { %8612 = vmatpush3.bf16.msra.mxu1 %v10180_v59  ;;  %v10344_v28 = vpack.c.bf16 %v2510_v3, %v2503_v5  ;;  %v2511_v53 = vsub.f32 %v2509_v61, %v2510_v3  ;;  %v2588_v60 = vsub.f32 %v2586_v50, %v2587_v42  ;;  %v10350_v39 = vpack.c.bf16 %v2594_v26, %v2587_v42 }
 0x224   : > { %8614 = vmatprep.subr.bf16.mxu1 %v10188_v62  ;;  %8736 = vmatpush3.bf16.msra.mxu0 %v10332_v43  ;;  %v2601_v3 = vand.u32 4294901760, %v2600_v48  ;;  %v2596_v47 = vand.u32 4294901760, %v2595_v44  ;;  %v10367_v44 = vsub.f32 %v10155_v51, %v11493_v21  ;;  %v10379_v61 = vsub.f32 %v10169_v57, %v11495_v41 }
 0x225   : > { %8738 = vmatprep.subr.bf16.mxu0 %v10344_v28  ;;  %v2512_v45 = vand.u32 4294901760, %v2511_v53  ;;  %v2589_v5 = vand.u32 4294901760, %v2588_v60  ;;  %v11496_v50 = vand.u32 4294901760, %v10174_v58 }
 0x226   : > { %v10352_v14 = vpack.c.bf16 %v2608_v38, %v2601_v3  ;;  %v2602_v53 = vsub.f32 %v2600_v48, %v2601_v3  ;;  %v2531_v57 = vand.u32 4294901760, %v10379_v61 }
 0x227   : > { %8616 = vmatpush3.bf16.msra.mxu1 %v10188_v62  ;;  %v10347_v1 = vpack.c.bf16 %v2512_v45, %v2505_v49  ;;  %v2609_v49 = vsub.f32 %v2607_v29, %v2608_v38  ;;  %v10354_v45 = vpack.c.bf16 %v2596_v47, %v2589_v5  ;;  %v10372_v38 = vsub.f32 %v10162_v54, %v11494_v31 }
 0x228   : > { %8618 = vmatprep.subr.bf16.mxu1 %v10207_v2  ;;  %v2603_v18 = vand.u32 4294901760, %v2602_v53  ;;  %v2517_v47 = vand.u32 4294901760, %v10367_v44  ;;  %v10384_v55 = vsub.f32 %v10174_v58, %v11496_v50  ;;  %v11497_v58 = vand.u32 4294901760, %v10195_v63 }
 0x229   : > { %v2610_v19 = vand.u32 4294901760, %v2609_v49  ;;  %v2524_v42 = vand.u32 4294901760, %v10372_v38  ;;  %v2532_v50 = vsub.f32 %v10379_v61, %v2531_v57 }
 0x22a   : > { %v2518_v48 = vsub.f32 %v10367_v44, %v2517_v47  ;;  %v2538_v3 = vand.u32 4294901760, %v10384_v55  ;;  %v10399_v49 = vsub.f32 %v10195_v63, %v11497_v58 }
 0x22b   : > { %8620 = vmatpush3.bf16.msra.mxu1 %v10207_v2  ;;  %v10356_v34 = vpack.c.bf16 %v2610_v19, %v2603_v18  ;;  %v2525_v5 = vsub.f32 %v10372_v38, %v2524_v42  ;;  %v2533_v35 = vand.u32 4294901760, %v2532_v50 }
 0x22c   : > { %8622 = vmatprep.subr.bf16.mxu1 %v10227_v9  ;;  %v2519_v21 = vand.u32 4294901760, %v2518_v48  ;;  %v2539_v63 = vsub.f32 %v10384_v55, %v2538_v3  ;;  %v8741_v48 = vpack.c.bf16 %v2524_v42, %v2517_v47 }
 0x22d   : > { %v2526_v41 = vand.u32 4294901760, %v2525_v5  ;;  %v11500_v5 = vand.u32 4294901760, %v10220_v8 }
 0x22e   : > { %v2540_v56 = vand.u32 4294901760, %v2539_v63 }
 0x22f   : > { %8624 = vmatpush3.bf16.msra.mxu1 %v10227_v9  ;;  %v8645_v16 = vpack.c.bf16 %v2526_v41, %v2519_v21 }
 0x230   : > { %8626 = vmatprep.subr.bf16.mxu1 %v10247_v27  ;;  %v8649_v50 = vpack.c.bf16 %v2540_v56, %v2533_v35 }
 0x233   : > { %8628 = vmatpush3.bf16.msra.mxu1 %v10247_v27 }
 0x234   : > { %8630 = vmatprep.subr.bf16.mxu1 %v10257_v36 }
 0x237   : > { %8632 = vmatpush3.bf16.msra.mxu1 %v10257_v36 }
 0x238   : > { %8634 = vmatprep.subr.bf16.mxu1 %v10320_v46 }
 0x23b   : > { %8636 = vmatpush3.bf16.msra.mxu1 %v10320_v46 }
 0x23c   : > { %8638 = vmatprep.subr.bf16.mxu1 %v10332_v43 }
 0x23f   : > { %8640 = vmatpush3.bf16.msra.mxu1 %v10332_v43 }
 0x240   : > { %8642 = vmatprep.subr.bf16.mxu1 %v10347_v1 }
 0x2f5   : > { %v7654_v51 = vpop.f32.mrb[24].mxu1 }
 0x2f6   : > { %v2392_v26 = vadd.f32 %v7654_v51, %v9886_v12  ;;  %v2381_v60 = vpop.f32.mrb[25].mxu1  ;;  %v11498_v12 = vand.u32 4294901760, %v10200_v0 }
 0x2f7   : > { %v2391_v54 = vadd.f32 %v2381_v60, %v9884_v11  ;;  %v2545_v60 = vand.u32 4294901760, %v10399_v49 }
 0x2f8   : > { %v10389_v29 = vand.u32 4294901760, %v2392_v26  ;;  %v10404_v11 = vsub.f32 %v10200_v0, %v11498_v12  ;;  %v10427_v12 = vsub.f32 %v10220_v8, %v11500_v5 }
 0x2f9   : > { %v10394_v53 = vand.u32 4294901760, %v2391_v54 }
 0x2fa   : > { %v10407_v18 = vsub.f32 %v2392_v26, %v10389_v29  ;;  %v2552_v0 = vand.u32 4294901760, %v10404_v11  ;;  %v11499_v26 = vand.u32 4294901760, %v10215_v6  ;;  %v2566_v5 = vand.u32 4294901760, %v10427_v12 }
 0x2fb   : > { %v10410_v19 = vsub.f32 %v2391_v54, %v10394_v53 }
 0x2fc   : > { %v2492_v31 = vand.u32 4294901760, %v10407_v18  ;;  %v10421_v58 = vsub.f32 %v10215_v6, %v11499_v26  ;;  %v2546_v26 = vsub.f32 %v10399_v49, %v2545_v60  ;;  %v2553_v47 = vsub.f32 %v10404_v11, %v2552_v0 }
 0x2fd   : > { %v2482_v51 = vand.u32 4294901760, %v10410_v19  ;;  %v8749_v63 = vpack.c.bf16 %v2552_v0, %v2545_v60 }
 0x2fe   : > { %v2493_v54 = vsub.f32 %v10407_v18, %v2492_v31  ;;  %v2559_v42 = vand.u32 4294901760, %v10421_v58 }
 0x2ff   : > { %7792 = vmatprep.mubr.f32.mxu0 %v2482_v51  ;;  %v2483_v37 = vsub.f32 %v10410_v19, %v2482_v51  ;;  %v2547_v51 = vand.u32 4294901760, %v2546_v26 }
 0x300   : > { %7793 = vmatmul.mubr.f32.vlgmr.msra.gmra.mrb[8].mxu0 %v2492_v31  ;;  %v2494_v8 = vand.u32 4294901760, %v2493_v54  ;;  %v11501_v31 = vand.u32 4294901760, %v10235_v20  ;;  %v2554_v54 = vand.u32 4294901760, %v2553_v47 }
 0x301   : > { %8740 = vmatpush3.bf16.msra.mxu0 %v10344_v28  ;;  %7827 = vmatprep.mubr.f32.mxu0 %v10394_v53  ;;  %v2484_v6 = vand.u32 4294901760, %v2483_v37  ;;  %v11502_v28 = vand.u32 4294901760, %v10240_v22  ;;  %v8745_v37 = vpack.c.bf16 %v2538_v3, %v2531_v57  ;;  %v8753_v57 = vpack.c.bf16 %v2566_v5, %v2559_v42 }
 0x302   : > { %8742 = vmatprep.subr.bf16.mxu0 %v8741_v48  ;;  %v10439_v21 = vsub.f32 %v10235_v20, %v11501_v31  ;;  %v2560_v20 = vsub.f32 %v10421_v58, %v2559_v42  ;;  %v2567_v31 = vsub.f32 %v10427_v12, %v2566_v5  ;;  %v11503_v5 = vld [vmem:[#allocation18_spill] sm:$0xff] }
 0x303   : > { %v10444_v41 = vsub.f32 %v10240_v22, %v11502_v28  ;;  %7687 = vmatprep.mubr.f32.mxu1 %v2484_v6  ;;  %v11505_v28 = vld [vmem:[#allocation20_spill] sm:$0xff] }
 0x304   : > { %7688 = vmatmul.mubr.f32.vlgmr.msra.gmra.mrb[26].mxu1 %v2494_v8  ;;  %v2573_v22 = vand.u32 4294901760, %v10439_v21  ;;  %v2561_v35 = vand.u32 4294901760, %v2560_v20  ;;  %v2568_v56 = vand.u32 4294901760, %v2567_v31  ;;  %v11511_v31 = vld [vmem:[#allocation28_spill] sm:$0xff] }
 0x305   : > { %8644 = vmatpush3.bf16.msra.mxu1 %v10347_v1  ;;  %8744 = vmatpush3.bf16.msra.mxu0 %v8741_v48  ;;  %v2580_v6 = vand.u32 4294901760, %v10444_v41  ;;  %v8653_v1 = vpack.c.bf16 %v2554_v54, %v2547_v51  ;;  %v11510_v54 = vld [vmem:[#allocation31_spill] sm:$0xff] }
 0x306   : > { %7722 = vmatprep.mubr.f32.mxu1 %v10394_v53  ;;  %8646 = vmatprep.subr.bf16.mxu1 %v8645_v16  ;;  %v2574_v3 = vsub.f32 %v10439_v21, %v2573_v22  ;;  %v8657_v0 = vpack.c.bf16 %v2568_v56, %v2561_v35  ;;  %v11514_v56 = vld [vmem:[#allocation29_spill] sm:$0xff] }
 0x307   : > { %8746 = vmatprep.subr.bf16.mxu0 %v8745_v37  ;;  %v2581_v60 = vsub.f32 %v10444_v41, %v2580_v6  ;;  %v8757_v48 = vpack.c.bf16 %v2580_v6, %v2573_v22  ;;  %v11512_v6 = vld [vmem:[#allocation30_spill] sm:$0xff] }
 0x308   : > { %v2575_v26 = vand.u32 4294901760, %v2574_v3 }
 0x309   : > { %8648 = vmatpush3.bf16.msra.mxu1 %v8645_v16  ;;  %8748 = vmatpush3.bf16.msra.mxu0 %v8745_v37  ;;  %v2582_v47 = vand.u32 4294901760, %v2581_v60  ;;  %v11507_v37 = vld [vmem:[#allocation21_spill] sm:$0xff] }
 0x30a   : > { %8650 = vmatprep.subr.bf16.mxu1 %v8649_v50  ;;  %8750 = vmatprep.subr.bf16.mxu0 %v8749_v63 }
 0x30b   : > { %v8661_v16 = vpack.c.bf16 %v2582_v47, %v2575_v26 }
 0x30d   : > { %8652 = vmatpush3.bf16.msra.mxu1 %v8649_v50  ;;  %8752 = vmatpush3.bf16.msra.mxu0 %v8749_v63  ;;  %v11508_v50 = vld [vmem:[#allocation26_spill] sm:$0xff] }
 0x30e   : > { %8654 = vmatprep.subr.bf16.mxu1 %v8653_v1  ;;  %8754 = vmatprep.subr.bf16.mxu0 %v8753_v57  ;;  %v11509_v63 = vld [vmem:[#allocation22_spill] sm:$0xff] }
 0x30f   : > { %v605_v51 = vsub.s32 1, %v11509_v63 }
 0x311   : > { %8656 = vmatpush3.bf16.msra.mxu1 %v8653_v1  ;;  %8756 = vmatpush3.bf16.msra.mxu0 %v8753_v57  ;;  %v606_v20 = vrot.slane %v11510_v54, %v605_v51  ;;  %v11513_v57 = vld [vmem:[#allocation27_spill] sm:$0xff] }
 0x312   : > { %8658 = vmatprep.subr.bf16.mxu1 %v8657_v0  ;;  %8758 = vmatprep.subr.bf16.mxu0 %v8757_v48 }
 0x313   : > { %v9334_v22 = vadd.f32 %v11511_v31, %v606_v20  ;;  %v9338_v1 = vadd.f32 %v11512_v6, %v606_v20  ;;  %v9332_v35 = vadd.f32 %v11513_v57, %v606_v20  ;;  %v9336_v3 = vadd.f32 %v11514_v56, %v606_v20 }
 0x315   : > { %8660 = vmatpush3.bf16.msra.mxu1 %v8657_v0  ;;  %8760 = vmatpush3.bf16.msra.mxu0 %v8757_v48 }
 0x316   : > { %8662 = vmatprep.subr.bf16.mxu1 %v8661_v16  ;;  %8762 = vmatprep.subr.bf16.mxu0 %v10350_v39 }
 0x319   : > { %8664 = vmatpush3.bf16.msra.mxu1 %v8661_v16  ;;  %8764 = vmatpush3.bf16.msra.mxu0 %v10350_v39  ;;  %v8677_v39 = vpack.c.bf16 %v10372_v38, %v10367_v44 }
 0x31a   : > { %8666 = vmatprep.subr.bf16.mxu1 %v10354_v45  ;;  %8766 = vmatprep.subr.bf16.mxu0 %v10352_v14 }
 0x31d   : > { %8668 = vmatpush3.bf16.msra.mxu1 %v10354_v45  ;;  %8768 = vmatpush3.bf16.msra.mxu0 %v10352_v14  ;;  %v8685_v14 = vpack.c.bf16 %v10404_v11, %v10399_v49 }
 0x31e   : > { %8670 = vmatprep.subr.bf16.mxu1 %v10356_v34  ;;  %8770 = vmatprep.subr.bf16.mxu0 %v10180_v59 }
 0x320   : > { %7828 = vmatmul.mubr.f32.vlgmr.msra.gmra.mrb[8].mxu0 %v10389_v29 }
 0x321   : > { %8672 = vmatpush3.bf16.msra.mxu1 %v10356_v34  ;;  %8772 = vmatpush3.bf16.msra.mxu0 %v10180_v59  ;;  %v8681_v59 = vpack.c.bf16 %v10384_v55, %v10379_v61 }
 0x322   : > { %7862 = vmatprep.mubr.f32.mxu0 %v10394_v53  ;;  %8674 = vmatprep.subr.bf16.mxu1 %v10358_v52 }
 0x323   : > { %8774 = vmatprep.subr.bf16.mxu0 %v10188_v62 }
 0x324   : > { %7723 = vmatmul.mubr.f32.vlgmr.msra.gmra.mrb[26].mxu1 %v10389_v29 }
 0x325   : > { %8676 = vmatpush3.bf16.msra.mxu1 %v10358_v52  ;;  %7757 = vmatprep.mubr.f32.mxu1 %v10410_v19 }
 0x326   : > { %8776 = vmatpush3.bf16.msra.mxu0 %v10188_v62  ;;  %8678 = vmatprep.subr.bf16.mxu1 %v8677_v39  ;;  %v8689_v62 = vpack.c.bf16 %v10427_v12, %v10421_v58 }
 0x327   : > { %8778 = vmatprep.subr.bf16.mxu0 %v10207_v2 }
 0x329   : > { %8680 = vmatpush3.bf16.msra.mxu1 %v8677_v39 }
 0x32a   : > { %8780 = vmatpush3.bf16.msra.mxu0 %v10207_v2  ;;  %8682 = vmatprep.subr.bf16.mxu1 %v8681_v59  ;;  %v8693_v2 = vpack.c.bf16 %v10444_v41, %v10439_v21  ;;  %v11504_v21 = vld [vmem:[#allocation17_spill] sm:$0xff]  ;;  %v11506_v41 = vld [vmem:[#allocation19_spill] sm:$0xff] }
 0x32b   : > { %8782 = vmatprep.subr.bf16.mxu0 %v10227_v9 }
 0x32d   : > { %8684 = vmatpush3.bf16.msra.mxu1 %v8681_v59 }
 0x32e   : > { %8784 = vmatpush3.bf16.msra.mxu0 %v10227_v9  ;;  %8686 = vmatprep.subr.bf16.mxu1 %v8685_v14 }
 0x32f   : > { %8786 = vmatprep.subr.bf16.mxu0 %v10247_v27 }
 0x331   : > { %8688 = vmatpush3.bf16.msra.mxu1 %v8685_v14 }
 0x332   : > { %8788 = vmatpush3.bf16.msra.mxu0 %v10247_v27  ;;  %8690 = vmatprep.subr.bf16.mxu1 %v8689_v62 }
 0x333   : > { %8790 = vmatprep.subr.bf16.mxu0 %v10257_v36 }
 0x335   : > { %8692 = vmatpush3.bf16.msra.mxu1 %v8689_v62 }
 0x336   : > { %8792 = vmatpush3.bf16.msra.mxu0 %v10257_v36  ;;  %8694 = vmatprep.subr.bf16.mxu1 %v8693_v2  ;;  %v6940_v36 = vld [vmem:[%s11373_s8] ss:$0 sm:$0xff] }
 0x337   : > { %8794 = vmatprep.subr.bf16.mxu0 %v10320_v46 }
 0x339   : > { %8696 = vmatpush3.bf16.msra.mxu1 %v8693_v2 }
 0x33a   : > { %8796 = vmatpush3.bf16.msra.mxu0 %v10320_v46  ;;  %8698 = vmatprep.subr.bf16.mxu1 %v10360_v40 }
 0x33b   : > { %8798 = vmatprep.subr.bf16.mxu0 %v10332_v43 }
 0x33d   : > { %8700 = vmatpush3.bf16.msra.mxu1 %v10360_v40 }
 0x33e   : > { %8800 = vmatpush3.bf16.msra.mxu0 %v10332_v43  ;;  %8702 = vmatprep.subr.bf16.mxu1 %v10362_v25 }
 0x341   : > { %7863 = vmatmul.mubr.f32.vlgmr.msra.gmra.mrb[8].mxu0 %v10389_v29  ;;  %8704 = vmatpush3.bf16.msra.mxu1 %v10362_v25 }
 0x342   : > { %7869 = vmatprep.mubr.f32.mxu0 %v10043_v24 }
 0x344   : > { %7758 = vmatmul.mubr.f32.vlgmr.msra.gmra.mrb[26].mxu1 %v10407_v18 }
 0x345   : > { %7872 = vmatprep.mubr.f32.mxu1 %v10060_v32 }
 0x414   : > { %v7864_v9 = vpop.f32.mrb[8].mxu0 }
 0x415   : > { %v3073_v27 = vpop.f32.mrb[9].mxu0 }
 0x417   : > { %v7759_v46 = vpop.f32.mrb[26].mxu1 }
 0x418   : > { %v9339_v43 = vadd.f32 %v7759_v46, %v6940_v36  ;;  %v2757_v45 = vpop.f32.mrb[27].mxu1 }
 0x419   : > { %v9341_v34 = vadd.f32 %v6940_v36, %v2757_v45 }
 0x41a   : > { %v9340_v52 = vadd.f32 %v9339_v43, %v7864_v9 }
 0x41b   : > { %v9342_v40 = vadd.f32 %v9341_v34, %v3073_v27 }
 0x41c   : > { %v10505_v44 = vmax.f32 %v9340_v52, 0.0 }
 0x41d   : > { %v10507_v25 = vmax.f32 %v9342_v40, 0.0 }
 0x41e   : > { %v3106_v38 = vand.u32 4294901760, %v10505_v44 }
 0x41f   : > { %v3103_v61 = vand.u32 4294901760, %v10507_v25 }
 0x420   : > { %v3218_v55 = vsub.f32 %v10505_v44, %v3106_v38 }
 0x421   : > { %v8801_v29 = vpack.c.bf16 %v3106_v38, %v3103_v61  ;;  %v3211_v53 = vsub.f32 %v10507_v25, %v3103_v61 }
 0x422   : > { %v3219_v49 = vand.u32 4294901760, %v3218_v55 }
 0x423   : > { %8802 = vmatprep.subr.bf16.mxu0 %v8801_v29  ;;  %9329 = vmatprep.subr.bf16.mxu1 %v8801_v29  ;;  %v3212_v11 = vand.u32 4294901760, %v3211_v53  ;;  %v8809_v8 = vpack.c.bf16 %v3218_v55, %v3211_v53 }
 0x424   : > { %8804 = vmatpush3.bf16.msra.mxu0 %v8801_v29  ;;  %9330 = vmatpush3.bf16.msra.mxu1 %v8801_v29  ;;  %v3220_v18 = vsub.f32 %v3218_v55, %v3219_v49 }
 0x425   : > { %v3213_v19 = vsub.f32 %v3211_v53, %v3212_v11 }
 0x426   : > { %v3221_v58 = vand.u32 4294901760, %v3220_v18 }
 0x427   : > { %7870 = vmatmul.mubr.f32.vlgmr.msra.gmra.mrb[10].mxu0 %v10056_v30  ;;  %7873 = vmatmul.mubr.f32.vlgmr.msra.gmra.mrb[28].mxu1 %v10065_v33  ;;  %v3214_v12 = vand.u32 4294901760, %v3213_v19 }
 0x428   : > { %7879 = vmatprep.mubr.msk.f32.mxu1 %vm1251_vm2, %v10013_v7  ;;  %8205 = vmatprep.mubr.f32.mxu0 %v10043_v24  ;;  %v8817_v24 = vpack.c.bf16 %v3219_v49, %v3212_v11 }
 0x429   : > { %v8805_v42 = vpack.c.bf16 %v3221_v58, %v3214_v12 }
 0x42b   : > { %8806 = vmatprep.subr.bf16.mxu1 %v8805_v42 }
 0x42c   : > { %8808 = vmatpush3.bf16.msra.mxu1 %v8805_v42 }
 0x42d   : > { %8810 = vmatprep.subr.bf16.mxu1 %v8809_v8 }
 0x42f   : > { %7880 = vmatmul.mubr.msk.f32.vlgmr.msra.gmra.mrb[30].mxu1 %vm1251_vm2, %v10027_v17 }
 0x430   : > { %7882 = vmatprep.mubr.msk.f32.mxu1 %vm1251_vm2, %v10008_v4  ;;  %8812 = vmatpush3.bf16.msra.mxu1 %v8809_v8 }
 0x431   : > { %8814 = vmatprep.subr.bf16.mxu1 %v8801_v29 }
 0x433   : > { %7883 = vmatmul.mubr.msk.f32.gmra.mrb[32].mxu1 %vm1251_vm2, %v10020_v13 }
 0x434   : > { %7889 = vmatprep.mubr.f32.mxu1 %v10022_v15 }
 0x437   : > { %7890 = vmatmul.mubr.f32.vlgmr.msra.gmra.mrb[34].mxu1 %v10041_v23 }
 0x438   : > { %8816 = vmatpush3.bf16.msra.mxu1 %v8801_v29  ;;  %7892 = vmatprep.mubr.f32.mxu1 %v10017_v10 }
 0x439   : > { %8818 = vmatprep.subr.bf16.mxu1 %v8817_v24 }
 0x43b   : > { %7893 = vmatmul.mubr.f32.gmra.mrb[36].mxu1 %v11503_v5 }
 0x43c   : > { %7899 = vmatprep.mubr.f32.mxu1 %v11504_v21 }
 0x43f   : > { %7900 = vmatmul.mubr.f32.vlgmr.msra.gmra.mrb[38].mxu1 %v11505_v28 }
 0x440   : > { %8820 = vmatpush3.bf16.msra.mxu1 %v8817_v24  ;;  %7902 = vmatprep.mubr.f32.mxu1 %v11506_v41 }
 0x441   : > { %8822 = vmatprep.subr.bf16.mxu1 %v8801_v29 }
 0x443   : > { %7903 = vmatmul.mubr.f32.gmra.mrb[40].mxu1 %v11507_v37 }
 0x444   : > { %7909 = vmatprep.mubr.msk.f32.mxu1 %vm1251_vm2, %v10013_v7 }
 0x447   : > { %7910 = vmatmul.mubr.msk.f32.vlgmr.msra.gmra.mrb[42].mxu1 %vm1251_vm2, %v10027_v17 }
 0x448   : > { %8824 = vmatpush3.bf16.msra.mxu1 %v8801_v29  ;;  %7912 = vmatprep.mubr.msk.f32.mxu1 %vm1251_vm2, %v10008_v4 }
 0x44b   : > { %7913 = vmatmul.mubr.msk.f32.gmra.mrb[44].mxu1 %vm1251_vm2, %v10020_v13 }
 0x44c   : > { %7919 = vmatprep.mubr.msk.f32.mxu1 %vm1251_vm2, %v10013_v7 }
 0x44f   : > { %7920 = vmatmul.mubr.msk.f32.vlgmr.msra.gmra.mrb[46].mxu1 %vm1251_vm2, %v10027_v17 }
 0x450   : > { %7922 = vmatprep.mubr.msk.f32.mxu1 %vm1251_vm2, %v10008_v4 }
 0x453   : > { %7923 = vmatmul.mubr.msk.f32.gmra.mrb[48].mxu1 %vm1251_vm2, %v10020_v13 }
 0x454   : > { %7933 = vmatprep.mubr.f32.mxu1 %v11508_v50 }
 0x4fa   : > { %v7871_v60 = vpop.f32.mrb[10].mxu0  ;;  %v7874_v0 = vpop.f32.mrb[28].mxu1 }
 0x4fb   : > { %v3186_v48 = vadd.f32 %v9334_v22, %v7871_v60  ;;  %v3206_v26 = vadd.f32 %v9338_v1, %v7874_v0  ;;  %v3175_v47 = vpop.f32.mrb[11].mxu0  ;;  %v3195_v16 = vpop.f32.mrb[29].mxu1 }
 0x4fc   : > { %v3176_v39 = vadd.f32 %v9332_v35, %v3175_v47  ;;  %v3196_v59 = vadd.f32 %v9336_v3, %v3195_v16 }
 0x502   : > { %v7881_v14 = vpop.f32.mrb[30].mxu1 }
 0x503   : > { %v3293_v62 = vadd.f32 %v7881_v14, %v3186_v48  ;;  %v3286_v2 = vpop.f32.mrb[31].mxu1 }
 0x504   : > { %v3287_v9 = vadd.f32 %v3286_v2, %v3176_v39 }
 0x506   : > { %v7884_v27 = vpop.f32.mrb[32].mxu1 }
 0x507   : > { %v3305_v36 = vadd.f32 %v7884_v27, %v3206_v26  ;;  %v3298_v46 = vpop.f32.mrb[33].mxu1 }
 0x508   : > { %v3299_v43 = vadd.f32 %v3298_v46, %v3196_v59 }
 0x50a   : > { %v7891_v45 = vpop.f32.mrb[34].mxu1 }
 0x50b   : > { %v3388_v34 = vadd.f32 %v7891_v45, %v3293_v62  ;;  %v3380_v52 = vpop.f32.mrb[35].mxu1 }
 0x50c   : > { %v3381_v40 = vadd.f32 %v3380_v52, %v3287_v9 }
 0x50e   : > { %v7894_v38 = vpop.f32.mrb[36].mxu1 }
 0x50f   : > { %v3402_v61 = vadd.f32 %v7894_v38, %v3305_v36  ;;  %v3394_v55 = vpop.f32.mrb[37].mxu1 }
 0x510   : > { %v3395_v29 = vadd.f32 %v3394_v55, %v3299_v43 }
 0x512   : > { %v7901_v53 = vpop.f32.mrb[38].mxu1 }
 0x513   : > { %v3485_v49 = vadd.f32 %v7901_v53, %v3388_v34  ;;  %v3476_v11 = vpop.f32.mrb[39].mxu1 }
 0x514   : > { %v3477_v18 = vadd.f32 %v3476_v11, %v3381_v40 }
 0x516   : > { %v7904_v19 = vpop.f32.mrb[40].mxu1 }
 0x517   : > { %v3501_v58 = vadd.f32 %v7904_v19, %v3402_v61  ;;  %v3492_v12 = vpop.f32.mrb[41].mxu1 }
 0x518   : > { %v3493_v42 = vadd.f32 %v3492_v12, %v3395_v29 }
 0x51a   : > { %v7911_v8 = vpop.f32.mrb[42].mxu1 }
 0x51b   : > { %v3584_v24 = vadd.f32 %v7911_v8, %v3485_v49  ;;  %v3577_v63 = vpop.f32.mrb[43].mxu1  ;;  %v11515_v8 = vld [vmem:[#allocation35_spill] sm:$0xff] }
 0x51c   : > { %v3578_v51 = vadd.f32 %v3577_v63, %v3477_v18  ;;  %v11516_v63 = vld [vmem:[#allocation23_spill] sm:$0xff] }
 0x51e   : > { %v7914_v54 = vpop.f32.mrb[44].mxu1 }
 0x51f   : > { %v3596_v20 = vadd.f32 %v7914_v54, %v3501_v58  ;;  %v3589_v31 = vpop.f32.mrb[45].mxu1  ;;  %v11517_v54 = vld [vmem:[#allocation32_spill] sm:$0xff] }
 0x520   : > { %v3590_v22 = vadd.f32 %v3589_v31, %v3493_v42  ;;  %v11519_v31 = vld [vmem:[#allocation33_spill] sm:$0xff] }
 0x522   : > { %v7921_v6 = vpop.f32.mrb[46].mxu1 }
 0x523   : > { %v3675_v1 = vadd.f32 %v7921_v6, %v3584_v24  ;;  %v3668_v57 = vpop.f32.mrb[47].mxu1  ;;  %v11521_v6 = vld [vmem:[#allocation34_spill] sm:$0xff] }
 0x524   : > { %v3669_v35 = vadd.f32 %v3668_v57, %v3578_v51  ;;  %v3086_v57 = vld [vmem:[#allocation2 + $0x8] sm:$0xff] }
 0x525   : > { %v3691_v56 = vmax.f32 %v3675_v1, 0.0  ;;  %v3085_v1 = vld [vmem:[#allocation2] sm:$0xff] }
 0x526   : > { %v3690_v3 = vmax.f32 %v3669_v35, 0.0  ;;  %v7924_v60 = vpop.f32.mrb[48].mxu1  ;;  %v4231_v35 = vand.u32 4294901760, %v3085_v1 }
 0x527   : > { %v3698_v0 = vand.u32 4294901760, %v3691_v56  ;;  %v3687_v48 = vadd.f32 %v7924_v60, %v3596_v20  ;;  %v3680_v26 = vpop.f32.mrb[49].mxu1  ;;  %v11518_v20 = vld [vmem:[#allocation24_spill] sm:$0xff] }
 0x528   : > { %v3695_v47 = vand.u32 4294901760, %v3690_v3  ;;  %v3681_v16 = vadd.f32 %v3680_v26, %v3590_v22  ;;  %v11520_v22 = vld [vmem:[#allocation25_spill] sm:$0xff]  ;;  %v10568_v60 = vld [vmem:[#allocation2 + $0x18] sm:$0xff] }
 0x529   : > { %v3792_v39 = vsub.f32 %v3691_v56, %v3698_v0  ;;  %v3693_v59 = vmax.f32 %v3687_v48, 0.0  ;;  %v4234_v56 = vand.u32 4294901760, %v3086_v57  ;;  %v11436_v26 = vand.u32 4294901760, %v10568_v60 }
 0x52a   : > { %v8825_v14 = vpack.c.bf16 %v3698_v0, %v3695_v47  ;;  %v3785_v62 = vsub.f32 %v3690_v3, %v3695_v47  ;;  %v3692_v2 = vmax.f32 %v3681_v16, 0.0  ;;  %v10566_v3 = vld [vmem:[#allocation2 + $0x10] sm:$0xff]  ;;  %v10578_v47 = vld [vmem:[#allocation2 + $0x20] sm:$0xff]  ;;  %v10580_v16 = vld [vmem:[#allocation2 + $0x28] sm:$0xff] }
 0x52b   : > { %v3793_v9 = vand.u32 4294901760, %v3792_v39  ;;  %v3704_v27 = vand.u32 4294901760, %v3693_v59  ;;  %v10574_v0 = vpack.c.bf16 %v4234_v56, %v4231_v35  ;;  %v11437_v48 = vand.u32 4294901760, %v10566_v3 }
 0x52c   : > { %v3786_v36 = vand.u32 4294901760, %v3785_v62  ;;  %v3701_v46 = vand.u32 4294901760, %v3692_v2  ;;  %8826 = vmatprep.subr.bf16.mxu1 %v8825_v14  ;;  %v8841_v43 = vpack.c.bf16 %v3792_v39, %v3785_v62 }
 0x52d   : > { %v3806_v45 = vsub.f32 %v3693_v59, %v3704_v27  ;;  %8828 = vmatpush3.bf16.msra.mxu1 %v8825_v14  ;;  %v3794_v34 = vsub.f32 %v3792_v39, %v3793_v9  ;;  %v10587_v39 = vpack.c.bf16 %v11436_v26, %v11437_v48  ;;  %v11435_v59 = vand.u32 4294901760, %v10578_v47 }
 0x52e   : > { %v8829_v52 = vpack.c.bf16 %v3704_v27, %v3701_v46  ;;  %v3799_v40 = vsub.f32 %v3692_v2, %v3701_v46  ;;  %v3787_v38 = vsub.f32 %v3785_v62, %v3786_v36  ;;  %v8857_v61 = vpack.c.bf16 %v3793_v9, %v3786_v36  ;;  %v10591_v62 = vld [vmem:[#allocation2 + $0x30] sm:$0xff]  ;;  %v10593_v2 = vld [vmem:[#allocation2 + $0x38] sm:$0xff]  ;;  %v10607_v46 = vld [vmem:[#allocation2 + $0x40] sm:$0xff] }
 0x52f   : > { %v3807_v55 = vand.u32 4294901760, %v3806_v45  ;;  %v3795_v29 = vand.u32 4294901760, %v3794_v34  ;;  %v11433_v27 = vand.u32 4294901760, %v10591_v62  ;;  %v11432_v36 = vand.u32 4294901760, %v10593_v2 }
 0x530   : > { %v3800_v53 = vand.u32 4294901760, %v3799_v40  ;;  %8830 = vmatprep.subr.bf16.mxu1 %v8829_v52  ;;  %v3788_v49 = vand.u32 4294901760, %v3787_v38  ;;  %v8845_v11 = vpack.c.bf16 %v3806_v45, %v3799_v40  ;;  %v11431_v34 = vand.u32 4294901760, %v10607_v46  ;;  %v3095_v38 = vld [vmem:[#allocation2 + $0x50] sm:$0xff] }
 0x531   : > { %8832 = vmatpush3.bf16.msra.mxu1 %v8829_v52  ;;  %v3808_v18 = vsub.f32 %v3806_v45, %v3807_v55  ;;  %v10617_v45 = vpack.c.bf16 %v11432_v36, %v11433_v27 }
 0x532   : > { %v8833_v19 = vpack.c.bf16 %v3795_v29, %v3788_v49  ;;  %v3801_v58 = vsub.f32 %v3799_v40, %v3800_v53  ;;  %v8861_v12 = vpack.c.bf16 %v3807_v55, %v3800_v53  ;;  %v4261_v55 = vand.u32 4294901760, %v3095_v38  ;;  %v3097_v49 = vld [vmem:[#allocation2 + $0x60] sm:$0xff] }
 0x533   : > { %v3809_v42 = vand.u32 4294901760, %v3808_v18  ;;  %v4267_v18 = vand.u32 4294901760, %v3097_v49 }
 0x534   : > { %7934 = vmatmul.mubr.f32.vlgmr.msra.gmra.mrb[50].mxu1 %v11515_v8  ;;  %8834 = vmatprep.subr.bf16.mxu1 %v8833_v19  ;;  %v3802_v24 = vand.u32 4294901760, %v3801_v58  ;;  %v10659_v26 = vsub.f32 %v3095_v38, %v4261_v55 }
 0x535   : > { %8836 = vmatpush3.bf16.msra.mxu1 %v8833_v19  ;;  %7944 = vmatprep.mubr.msk.f32.mxu1 %vm1856_vm7, %v11516_v63 }
 0x536   : > { %v8837_v51 = vpack.c.bf16 %v3809_v42, %v3802_v24  ;;  %v10640_v42 = vsub.f32 %v3086_v57, %v4234_v56  ;;  %v3099_v24 = vld [vmem:[#allocation2 + $0x70] sm:$0xff] }
 0x538   : > { %8838 = vmatprep.subr.bf16.mxu1 %v8837_v51  ;;  %v11439_v27 = vand.u32 4294901760, %v10640_v42 }
 0x539   : > { %8840 = vmatpush3.bf16.msra.mxu1 %v8837_v51  ;;  %v3100_v51 = vld [vmem:[#allocation2 + $0x78] sm:$0xff] }
 0x53a   : > { %8842 = vmatprep.subr.bf16.mxu1 %v8841_v43  ;;  %v4342_v57 = vsub.f32 %v10640_v42, %v11439_v27 }
 0x53c   : > { %7945 = vmatmul.mubr.msk.f32.vlgmr.msra.gmra.mrb[50].mxu1 %vm1856_vm7, %v11517_v54  ;;  %v4343_v56 = vand.u32 4294901760, %v4342_v57  ;;  %v10671_v57 = vsub.f32 %v3097_v49, %v4267_v18 }
 0x53d   : > { %8844 = vmatpush3.bf16.msra.mxu1 %v8841_v43  ;;  %7955 = vmatprep.mubr.f32.mxu1 %v11518_v20  ;;  %v10609_v43 = vld [vmem:[#allocation2 + $0x48] sm:$0xff] }
 0x53e   : > { %8846 = vmatprep.subr.bf16.mxu1 %v8845_v11  ;;  %v11532_v8 = vand.u32 4294901760, %v10609_v43 }
 0x541   : > { %8848 = vmatpush3.bf16.msra.mxu1 %v8845_v11  ;;  %v3098_v11 = vld [vmem:[#allocation2 + $0x68] sm:$0xff] }
 0x542   : > { %8850 = vmatprep.subr.bf16.mxu1 %v8825_v14  ;;  %v4270_v19 = vand.u32 4294901760, %v3098_v11 }
 0x544   : > { %7956 = vmatmul.mubr.f32.vlgmr.msra.gmra.mrb[50].mxu1 %v11519_v31  ;;  %v10636_v58 = vpack.c.bf16 %v4270_v19, %v4267_v18  ;;  %v11525_v31 = vand.u32 4294901760, %v10580_v16 }
 0x545   : > { %8852 = vmatpush3.bf16.msra.mxu1 %v8825_v14  ;;  %7966 = vmatprep.mubr.f32.mxu1 %v11520_v22 }
 0x546   : > { %8854 = vmatprep.subr.bf16.mxu1 %v8829_v52 }
 0x549   : > { %8856 = vmatpush3.bf16.msra.mxu1 %v8829_v52 }
 0x54a   : > { %8858 = vmatprep.subr.bf16.mxu1 %v8857_v61 }
 0x54c   : > { %7967 = vmatmul.mubr.f32.vlgmr.msra.gmra.mrb[50].mxu1 %v11521_v6 }
 0x54d   : > { %8860 = vmatpush3.bf16.msra.mxu1 %v8857_v61  ;;  %7977 = vmatprep.mubr.msk.f32.mxu1 %vm1856_vm7, %v11516_v63  ;;  %v3096_v61 = vld [vmem:[#allocation2 + $0x58] sm:$0xff] }
 0x54e   : > { %8862 = vmatprep.subr.bf16.mxu1 %v8861_v12  ;;  %v4264_v29 = vand.u32 4294901760, %v3096_v61 }
 0x550   : > { %v10632_v53 = vpack.c.bf16 %v4264_v29, %v4261_v55  ;;  %v10661_v48 = vsub.f32 %v3096_v61, %v4264_v29  ;;  %v11445_v61 = vand.u32 4294901760, %v10671_v57 }
 0x551   : > { %8864 = vmatpush3.bf16.msra.mxu1 %v8861_v12  ;;  %v10638_v12 = vsub.f32 %v3085_v1, %v4231_v35 }
 0x552   : > { %8866 = vmatprep.subr.bf16.mxu1 %v8825_v14  ;;  %v11441_v6 = vand.u32 4294901760, %v10661_v48 }
 0x553   : > { %v11438_v36 = vand.u32 4294901760, %v10638_v12 }
 0x554   : > { %7978 = vmatmul.mubr.msk.f32.vlgmr.msra.gmra.mrb[50].mxu1 %vm1856_vm7, %v11517_v54 }
 0x555   : > { %8868 = vmatpush3.bf16.msra.mxu1 %v8825_v14  ;;  %7988 = vmatprep.mubr.msk.f32.mxu1 %vm1856_vm7, %v11516_v63  ;;  %v11434_v14 = vand.u32 4294901760, %v10580_v16  ;;  %v4335_v1 = vsub.f32 %v10638_v12, %v11438_v36  ;;  %v11440_v36 = vand.u32 4294901760, %v10659_v26 }
 0x556   : > { %8870 = vmatprep.subr.bf16.mxu1 %v8829_v52 }
 0x557   : > { %v10603_v9 = vpack.c.bf16 %v11434_v14, %v11435_v59  ;;  %v4336_v35 = vand.u32 4294901760, %v4335_v1  ;;  %v4405_v27 = vsub.f32 %v10659_v26, %v11440_v36  ;;  %v4412_v1 = vsub.f32 %v10661_v48, %v11441_v6 }
 0x558   : > { %v4419_v36 = vsub.f32 %v10671_v57, %v11445_v61  ;;  %v11524_v61 = vand.u32 4294901760, %v10578_v47 }
 0x559   : > { %8872 = vmatpush3.bf16.msra.mxu1 %v8829_v52  ;;  %v11430_v52 = vand.u32 4294901760, %v10609_v43  ;;  %v10656_v59 = vpack.c.bf16 %v4343_v56, %v4336_v35  ;;  %v10673_v35 = vsub.f32 %v3098_v11, %v4270_v19  ;;  %v4406_v38 = vand.u32 4294901760, %v4405_v27 }
 0x55a   : > { %8874 = vmatprep.subr.bf16.mxu1 %v10574_v0  ;;  %v4413_v55 = vand.u32 4294901760, %v4412_v1  ;;  %v4420_v27 = vand.u32 4294901760, %v4419_v36  ;;  %v10707_v36 = vpack.c.bf16 %v10661_v48, %v10659_v26  ;;  %v10732_v22 = vsub.f32 %v10578_v47, %v11524_v61 }
 0x55b   : > { %v10627_v40 = vpack.c.bf16 %v11430_v52, %v11431_v34  ;;  %v4273_v52 = vand.u32 4294901760, %v3099_v24  ;;  %v4276_v34 = vand.u32 4294901760, %v3100_v51  ;;  %v11442_v29 = vand.u32 4294901760, %v10673_v35 }
 0x55c   : > { %7989 = vmatmul.mubr.msk.f32.vlgmr.msra.gmra.mrb[50].mxu1 %vm1856_vm7, %v11517_v54  ;;  %v10677_v56 = vpack.c.bf16 %v4413_v55, %v4406_v38 }
 0x55d   : > { %8876 = vmatpush3.bf16.msra.mxu1 %v10574_v0  ;;  %v10646_v14 = vpack.c.bf16 %v4276_v34, %v4273_v52  ;;  %v4426_v6 = vsub.f32 %v10673_v35, %v11442_v29  ;;  %v10685_v49 = vsub.f32 %v3099_v24, %v4273_v52  ;;  %v10687_v11 = vsub.f32 %v3100_v51, %v4276_v34 }
 0x55e   : > { %8878 = vmatprep.subr.bf16.mxu1 %v10587_v39  ;;  %v10711_v51 = vpack.c.bf16 %v10673_v35, %v10671_v57 }
 0x55f   : > { %v4427_v18 = vand.u32 4294901760, %v4426_v6  ;;  %v11444_v19 = vand.u32 4294901760, %v10685_v49  ;;  %v11443_v1 = vand.u32 4294901760, %v10687_v11  ;;  %v10703_v6 = vpack.c.bf16 %v10640_v42, %v10638_v12 }
 0x561   : > { %8880 = vmatpush3.bf16.msra.mxu1 %v10587_v39  ;;  %v10691_v38 = vpack.c.bf16 %v4427_v18, %v4420_v27  ;;  %v4433_v55 = vsub.f32 %v10685_v49, %v11444_v19  ;;  %v4440_v29 = vsub.f32 %v10687_v11, %v11443_v1  ;;  %v10715_v27 = vpack.c.bf16 %v10687_v11, %v10685_v49 }
 0x562   : > { %8882 = vmatprep.subr.bf16.mxu1 %v10603_v9 }
 0x563   : > { %v4434_v52 = vand.u32 4294901760, %v4433_v55  ;;  %v4441_v24 = vand.u32 4294901760, %v4440_v29  ;;  %v11522_v29 = vand.u32 4294901760, %v10566_v3  ;;  %v11523_v55 = vand.u32 4294901760, %v10568_v60 }
 0x565   : > { %8884 = vmatpush3.bf16.msra.mxu1 %v10603_v9  ;;  %v10699_v34 = vpack.c.bf16 %v4441_v24, %v4434_v52  ;;  %v10720_v18 = vsub.f32 %v10566_v3, %v11522_v29  ;;  %v10725_v52 = vsub.f32 %v10568_v60, %v11523_v55  ;;  %v10737_v3 = vsub.f32 %v10580_v16, %v11525_v31 }
 0x566   : > { %8886 = vmatprep.subr.bf16.mxu1 %v10617_v45 }
 0x567   : > { %v11447_v24 = vand.u32 4294901760, %v10720_v18  ;;  %v11526_v54 = vand.u32 4294901760, %v10725_v52 }
 0x569   : > { %8888 = vmatpush3.bf16.msra.mxu1 %v10617_v45  ;;  %v4349_v1 = vsub.f32 %v10720_v18, %v11447_v24  ;;  %v4356_v47 = vsub.f32 %v10725_v52, %v11526_v54 }
 0x56a   : > { %8890 = vmatprep.subr.bf16.mxu1 %v10627_v40 }
 0x56b   : > { %v4350_v63 = vand.u32 4294901760, %v4349_v1  ;;  %v4357_v16 = vand.u32 4294901760, %v4356_v47  ;;  %v11531_v1 = vand.u32 4294901760, %v10607_v46 }
 0x56d   : > { %8892 = vmatpush3.bf16.msra.mxu1 %v10627_v40  ;;  %v10785_v47 = vsub.f32 %v10607_v46, %v11531_v1  ;;  %v8909_v37 = vpack.c.bf16 %v4357_v16, %v4350_v63 }
 0x56e   : > { %8894 = vmatprep.subr.bf16.mxu1 %v10632_v53 }
 0x571   : > { %8896 = vmatpush3.bf16.msra.mxu1 %v10632_v53 }
 0x572   : > { %8898 = vmatprep.subr.bf16.mxu1 %v10636_v58 }
 0x575   : > { %8900 = vmatpush3.bf16.msra.mxu1 %v10636_v58 }
 0x576   : > { %8902 = vmatprep.subr.bf16.mxu1 %v10646_v14 }
 0x579   : > { %8904 = vmatpush3.bf16.msra.mxu1 %v10646_v14 }
 0x57a   : > { %8906 = vmatprep.subr.bf16.mxu1 %v10656_v59 }
 0x62f   : > { %v7990_v19 = vpop.f32.mrb[50].mxu1 }
 0x630   : > { %v4223_v29 = vadd.f32 %v7990_v19, %v10505_v44  ;;  %v4212_v20 = vpop.f32.mrb[51].mxu1  ;;  %v11527_v44 = vand.u32 4294901760, %v10591_v62  ;;  %v11528_v19 = vand.u32 4294901760, %v10593_v2 }
 0x631   : > { %v4222_v60 = vadd.f32 %v4212_v20, %v10507_v25 }
 0x632   : > { %v10741_v55 = vand.u32 4294901760, %v4223_v29  ;;  %v10756_v25 = vsub.f32 %v10591_v62, %v11527_v44  ;;  %v10764_v24 = vsub.f32 %v10593_v2, %v11528_v19  ;;  %v11529_v62 = vand.u32 4294901760, %v10732_v22 }
 0x633   : > { %v10749_v61 = vand.u32 4294901760, %v4222_v60 }
 0x634   : > { %v10759_v20 = vsub.f32 %v4223_v29, %v10741_v55  ;;  %v4363_v44 = vsub.f32 %v10732_v22, %v11529_v62  ;;  %v11530_v29 = vand.u32 4294901760, %v10737_v3  ;;  %v10790_v62 = vsub.f32 %v10609_v43, %v11532_v8 }
 0x635   : > { %v10767_v54 = vsub.f32 %v4222_v60, %v10749_v61  ;;  %v11534_v19 = vand.u32 4294901760, %v10756_v25  ;;  %v11535_v46 = vand.u32 4294901760, %v10764_v24  ;;  %v4390_v8 = vand.u32 4294901760, %v10785_v47 }
 0x636   : > { %v11449_v31 = vand.u32 4294901760, %v10759_v20  ;;  %v4370_v50 = vsub.f32 %v10737_v3, %v11530_v29  ;;  %v4364_v28 = vand.u32 4294901760, %v4363_v44  ;;  %v4397_v43 = vand.u32 4294901760, %v10790_v62 }
 0x637   : > { %v11533_v29 = vand.u32 4294901760, %v10767_v54  ;;  %v4377_v21 = vsub.f32 %v10756_v25, %v11534_v19  ;;  %v4384_v1 = vsub.f32 %v10764_v24, %v11535_v46  ;;  %v4391_v44 = vsub.f32 %v10785_v47, %v4390_v8 }
 0x638   : > { %v4324_v60 = vsub.f32 %v10759_v20, %v11449_v31  ;;  %v4371_v31 = vand.u32 4294901760, %v4370_v50 }
 0x639   : > { %v4314_v2 = vsub.f32 %v10767_v54, %v11533_v29  ;;  %v4378_v63 = vand.u32 4294901760, %v4377_v21  ;;  %v4385_v16 = vand.u32 4294901760, %v4384_v1  ;;  %v8941_v21 = vpack.c.bf16 %v10725_v52, %v10720_v18 }
 0x63a   : > { %v4325_v5 = vand.u32 4294901760, %v4324_v60  ;;  %v8913_v50 = vpack.c.bf16 %v4371_v31, %v4364_v28  ;;  %v8945_v28 = vpack.c.bf16 %v10737_v3, %v10732_v22 }
 0x63b   : > { %v4315_v41 = vand.u32 4294901760, %v4314_v2  ;;  %v4398_v2 = vsub.f32 %v10790_v62, %v4397_v43 }
 0x63d   : > { %8023 = vmatprep.mubr.f32.mxu1 %v4315_v41  ;;  %v8917_v41 = vpack.c.bf16 %v4385_v16, %v4378_v63  ;;  %v4399_v60 = vand.u32 4294901760, %v4398_v2 }
 0x63e   : > { %8024 = vmatmul.mubr.f32.vlgmr.msra.gmra.mrb[52].mxu1 %v4325_v5  ;;  %v4392_v5 = vand.u32 4294901760, %v4391_v44 }
 0x63f   : > { %8908 = vmatpush3.bf16.msra.mxu1 %v10656_v59  ;;  %8058 = vmatprep.mubr.f32.mxu1 %v10749_v61 }
 0x640   : > { %8910 = vmatprep.subr.bf16.mxu1 %v8909_v37  ;;  %v8921_v59 = vpack.c.bf16 %v4399_v60, %v4392_v5  ;;  %v11554_v60 = vld [vmem:[#allocation20_spill] sm:$0xff] }
 0x643   : > { %8912 = vmatpush3.bf16.msra.mxu1 %v8909_v37  ;;  %v8949_v37 = vpack.c.bf16 %v10764_v24, %v10756_v25  ;;  %v11549_v24 = vand.u32 4294901760, %v10673_v35 }
 0x644   : > { %8914 = vmatprep.subr.bf16.mxu1 %v8913_v50 }
 0x647   : > { %8916 = vmatpush3.bf16.msra.mxu1 %v8913_v50 }
 0x648   : > { %8918 = vmatprep.subr.bf16.mxu1 %v8917_v41 }
 0x64b   : > { %8920 = vmatpush3.bf16.msra.mxu1 %v8917_v41 }
 0x64c   : > { %8922 = vmatprep.subr.bf16.mxu1 %v8921_v59 }
 0x64f   : > { %8924 = vmatpush3.bf16.msra.mxu1 %v8921_v59  ;;  %v11555_v59 = vld [vmem:[#allocation19_spill] sm:$0xff] }
 0x650   : > { %8926 = vmatprep.subr.bf16.mxu1 %v10677_v56 }
 0x653   : > { %8928 = vmatpush3.bf16.msra.mxu1 %v10677_v56  ;;  %v8953_v56 = vpack.c.bf16 %v10790_v62, %v10785_v47  ;;  %v11550_v47 = vand.u32 4294901760, %v10685_v49  ;;  %v11551_v62 = vand.u32 4294901760, %v10687_v11 }
 0x654   : > { %8930 = vmatprep.subr.bf16.mxu1 %v10691_v38 }
 0x657   : > { %8932 = vmatpush3.bf16.msra.mxu1 %v10691_v38  ;;  %v11536_v38 = vmov %v11533_v29  ;;  %v11544_v29 = vand.u32 4294901760, %v10756_v25  ;;  %v11548_v25 = vand.u32 4294901760, %v10671_v57  ;;  %v10913_v57 = vpop.permute.xlu0 %4918 }
 0x658   : > { %8934 = vmatprep.subr.bf16.mxu1 %v10699_v34 }
 0x659   : > { %v9025_v1 = vpack.c.bf16 %v11549_v24, %v11548_v25 }
 0x65b   : > { %8936 = vmatpush3.bf16.msra.mxu1 %v10699_v34  ;;  %v11537_v34 = vand.u32 4294901760, %v10638_v12  ;;  %v11542_v12 = vand.u32 4294901760, %v10732_v22  ;;  %v11546_v22 = vand.u32 4294901760, %v10659_v26 }
 0x65c   : > { %8938 = vmatprep.subr.bf16.mxu1 %v10703_v6 }
 0x65e   : > { %8059 = vmatmul.mubr.f32.vlgmr.msra.gmra.mrb[52].mxu1 %v10741_v55 }
 0x65f   : > { %8940 = vmatpush3.bf16.msra.mxu1 %v10703_v6  ;;  %8093 = vmatprep.mubr.f32.mxu1 %v10767_v54  ;;  %v11538_v6 = vand.u32 4294901760, %v10640_v42  ;;  %v11541_v54 = vand.u32 4294901760, %v10759_v20  ;;  %v11543_v42 = vand.u32 4294901760, %v10737_v3  ;;  %v11547_v3 = vand.u32 4294901760, %v10661_v48 }
 0x660   : > { %8942 = vmatprep.subr.bf16.mxu1 %v8941_v21 }
 0x661   : > { %v9009_v19 = vpack.c.bf16 %v11543_v42, %v11542_v12 }
 0x663   : > { %8944 = vmatpush3.bf16.msra.mxu1 %v8941_v21  ;;  %v11556_v21 = vld [vmem:[#allocation21_spill] sm:$0xff] }
 0x664   : > { %8946 = vmatprep.subr.bf16.mxu1 %v8945_v28 }
 0x667   : > { %8948 = vmatpush3.bf16.msra.mxu1 %v8945_v28 }
 0x668   : > { %8950 = vmatprep.subr.bf16.mxu1 %v8949_v37 }
 0x66b   : > { %8952 = vmatpush3.bf16.msra.mxu1 %v8949_v37 }
 0x66c   : > { %8954 = vmatprep.subr.bf16.mxu1 %v8953_v56 }
 0x66f   : > { %8956 = vmatpush3.bf16.msra.mxu1 %v8953_v56 }
 0x670   : > { %8958 = vmatprep.subr.bf16.mxu1 %v10707_v36 }
 0x673   : > { %8960 = vmatpush3.bf16.msra.mxu1 %v10707_v36  ;;  %v9001_v36 = vpack.c.bf16 %v11538_v6, %v11537_v34 }
 0x674   : > { %8962 = vmatprep.subr.bf16.mxu1 %v10711_v51 }
 0x677   : > { %8964 = vmatpush3.bf16.msra.mxu1 %v10711_v51  ;;  %v11539_v51 = vand.u32 4294901760, %v10720_v18  ;;  %v11545_v18 = vmov %v11535_v46  ;;  %v9021_v46 = vpack.c.bf16 %v11547_v3, %v11546_v22 }
 0x678   : > { %8966 = vmatprep.subr.bf16.mxu1 %v10715_v27 }
 0x67b   : > { %8968 = vmatpush3.bf16.msra.mxu1 %v10715_v27  ;;  %v11540_v27 = vand.u32 4294901760, %v10725_v52  ;;  %v9013_v52 = vpack.c.bf16 %v11545_v18, %v11544_v29 }
 0x67c   : > { %8970 = vmatprep.subr.bf16.mxu1 %v10574_v0 }
 0x67d   : > { %v9005_v31 = vpack.c.bf16 %v11540_v27, %v11539_v51 }
 0x67e   : > { %8094 = vmatmul.mubr.f32.vlgmr.msra.gmra.mrb[52].mxu1 %v10759_v20  ;;  %v9017_v20 = vpack.c.bf16 %v4397_v43, %v4390_v8  ;;  %v9029_v8 = vpack.c.bf16 %v11551_v62, %v11550_v47  ;;  %v11558_v47 = vld [vmem:[#allocation35_spill] sm:$0xff] }
 0x67f   : > { %8972 = vmatpush3.bf16.msra.mxu1 %v10574_v0  ;;  %8128 = vmatprep.mubr.f32.mxu1 %v11536_v38 }
 0x680   : > { %8974 = vmatprep.subr.bf16.mxu1 %v10587_v39 }
 0x683   : > { %8976 = vmatpush3.bf16.msra.mxu1 %v10587_v39 }
 0x684   : > { %8978 = vmatprep.subr.bf16.mxu1 %v10603_v9 }
 0x687   : > { %8980 = vmatpush3.bf16.msra.mxu1 %v10603_v9 }
 0x688   : > { %8982 = vmatprep.subr.bf16.mxu1 %v10617_v45 }
 0x68b   : > { %8984 = vmatpush3.bf16.msra.mxu1 %v10617_v45 }
 0x68c   : > { %8986 = vmatprep.subr.bf16.mxu1 %v10627_v40 }
 0x68f   : > { %8988 = vmatpush3.bf16.msra.mxu1 %v10627_v40 }
 0x690   : > { %8990 = vmatprep.subr.bf16.mxu1 %v10632_v53 }
 0x693   : > { %8992 = vmatpush3.bf16.msra.mxu1 %v10632_v53 }
 0x694   : > { %8994 = vmatprep.subr.bf16.mxu1 %v10636_v58 }
 0x697   : > { %8996 = vmatpush3.bf16.msra.mxu1 %v10636_v58 }
 0x698   : > { %8998 = vmatprep.subr.bf16.mxu1 %v10646_v14 }
 0x69b   : > { %9000 = vmatpush3.bf16.msra.mxu1 %v10646_v14 }
 0x69c   : > { %9002 = vmatprep.subr.bf16.mxu1 %v9001_v36 }
 0x69e   : > { %8129 = vmatmul.mubr.f32.vlgmr.msra.gmra.mrb[52].mxu1 %v11541_v54 }
 0x69f   : > { %9004 = vmatpush3.bf16.msra.mxu1 %v9001_v36  ;;  %8163 = vmatprep.mubr.f32.mxu1 %v10749_v61 }
 0x6a0   : > { %9006 = vmatprep.subr.bf16.mxu1 %v9005_v31 }
 0x6a3   : > { %9008 = vmatpush3.bf16.msra.mxu1 %v9005_v31 }
 0x6a4   : > { %9010 = vmatprep.subr.bf16.mxu1 %v9009_v19 }
 0x6a7   : > { %9012 = vmatpush3.bf16.msra.mxu1 %v9009_v19 }
 0x6a8   : > { %9014 = vmatprep.subr.bf16.mxu1 %v9013_v52 }
 0x6ab   : > { %9016 = vmatpush3.bf16.msra.mxu1 %v9013_v52 }
 0x6ac   : > { %9018 = vmatprep.subr.bf16.mxu1 %v9017_v20 }
 0x6af   : > { %9020 = vmatpush3.bf16.msra.mxu1 %v9017_v20 }
 0x6b0   : > { %9022 = vmatprep.subr.bf16.mxu1 %v9021_v46 }
 0x6b3   : > { %9024 = vmatpush3.bf16.msra.mxu1 %v9021_v46 }
 0x6b4   : > { %9026 = vmatprep.subr.bf16.mxu1 %v9025_v1 }
 0x6b7   : > { %9028 = vmatpush3.bf16.msra.mxu1 %v9025_v1 }
 0x6b8   : > { %9030 = vmatprep.subr.bf16.mxu1 %v9029_v8 }
 0x6bb   : > { %9032 = vmatpush3.bf16.msra.mxu1 %v9029_v8  ;;  %v11559_v8 = vld [vmem:[#allocation23_spill] sm:$0xff] }
 0x6bc   : > { %9034 = vmatprep.subr.bf16.mxu1 %v10574_v0 }
 0x6be   : > { %8164 = vmatmul.mubr.f32.vlgmr.msra.gmra.mrb[52].mxu1 %v10741_v55 }
 0x6bf   : > { %9036 = vmatpush3.bf16.msra.mxu1 %v10574_v0  ;;  %8198 = vmatprep.mubr.f32.mxu1 %v10749_v61  ;;  %v6959_v0 = vld [vmem:[%s11375_s10] ss:$0 sm:$0xff] }
 0x6c0   : > { %9038 = vmatprep.subr.bf16.mxu1 %v10587_v39 }
 0x6c3   : > { %9040 = vmatpush3.bf16.msra.mxu1 %v10587_v39 }
 0x6c4   : > { %9042 = vmatprep.subr.bf16.mxu1 %v10603_v9 }
 0x6c7   : > { %9044 = vmatpush3.bf16.msra.mxu1 %v10603_v9 }
 0x6c8   : > { %9046 = vmatprep.subr.bf16.mxu1 %v10617_v45 }
 0x6cb   : > { %9048 = vmatpush3.bf16.msra.mxu1 %v10617_v45 }
 0x6cc   : > { %9050 = vmatprep.subr.bf16.mxu1 %v10627_v40 }
 0x6cf   : > { %9052 = vmatpush3.bf16.msra.mxu1 %v10627_v40  ;;  %v10911_v40 = vpop.permute.xlu1 %4923 }
 0x6d0   : > { %9054 = vmatprep.subr.bf16.mxu1 %v10632_v53 }
 0x6d3   : > { %9056 = vmatpush3.bf16.msra.mxu1 %v10632_v53 }
 0x6d4   : > { %9058 = vmatprep.subr.bf16.mxu1 %v10636_v58 }
 0x6d7   : > { %9060 = vmatpush3.bf16.msra.mxu1 %v10636_v58 }
 0x6d8   : > { %9062 = vmatprep.subr.bf16.mxu1 %v10646_v14 }
 0x6db   : > { %9064 = vmatpush3.bf16.msra.mxu1 %v10646_v14 }
 0x6de   : > { %8199 = vmatmul.mubr.f32.vlgmr.msra.gmra.mrb[52].mxu1 %v10741_v55 }
 0x7b1   : > { %v8200_v48 = vpop.f32.mrb[52].mxu1 }
 0x7b2   : > { %v9343_v26 = vadd.f32 %v8200_v48, %v6959_v0  ;;  %v4904_v39 = vpop.f32.mrb[53].mxu1  ;;  %v11560_v48 = vld [vmem:[#allocation32_spill] sm:$0xff] }
 0x7b3   : > { %v9344_v9 = vadd.f32 %v6959_v0, %v4904_v39  ;;  %v11562_v39 = vld [vmem:[#allocation33_spill] sm:$0xff] }
 0x7b4   : > { %v4915_v45 = vmax.f32 %v9343_v26, 0.0  ;;  %v11561_v26 = vld [vmem:[#allocation24_spill] sm:$0xff] }
 0x7b5   : > { %v4914_v53 = vmax.f32 %v9344_v9, 0.0  ;;  %v11563_v9 = vld [vmem:[#allocation25_spill] sm:$0xff] }
 0x7b6   : > { %v10916_v58 = vmul.f32 %v10911_v40, %v4915_v45  ;;  %v11564_v45 = vld [vmem:[#allocation34_spill] sm:$0xff] }
 0x7b7   : > { %v10919_v14 = vmul.f32 %v10913_v57, %v4914_v53  ;;  %v6046_v53 = vld [vmem:[#allocation5] sm:$0xff] }
 0x7b8   : > { %v4932_v35 = vand.u32 4294901760, %v10916_v58 }
 0x7b9   : > { %v4929_v49 = vand.u32 4294901760, %v10919_v14 }
 0x7ba   : > { %v5044_v11 = vsub.f32 %v10916_v58, %v4932_v35 }
 0x7bb   : > { %v9065_v55 = vpack.c.bf16 %v4932_v35, %v4929_v49  ;;  %v5037_v61 = vsub.f32 %v10919_v14, %v4929_v49  ;;  %v6047_v35 = vld [vmem:[#allocation5 + $0x8] sm:$0xff]  ;;  %v6070_v49 = vand.u32 4294901760, %v6046_v53 }
 0x7bc   : > { %v5045_v43 = vand.u32 4294901760, %v5044_v11 }
 0x7bd   : > { %9066 = vmatprep.subr.bf16.mxu0 %v9065_v55  ;;  %v5038_v50 = vand.u32 4294901760, %v5037_v61  ;;  %v9073_v5 = vpack.c.bf16 %v5044_v11, %v5037_v61 }
 0x7be   : > { %9068 = vmatpush3.bf16.msra.mxu0 %v9065_v55  ;;  %v5046_v63 = vsub.f32 %v5044_v11, %v5045_v43  ;;  %v6073_v11 = vand.u32 4294901760, %v6047_v35 }
 0x7bf   : > { %v5039_v16 = vsub.f32 %v5037_v61, %v5038_v50  ;;  %v10981_v61 = vld [vmem:[#allocation5 + $0x18] sm:$0xff] }
 0x7c0   : > { %v5047_v44 = vand.u32 4294901760, %v5046_v63  ;;  %v6079_v63 = vand.u32 4294901760, %v10981_v61 }
 0x7c1   : > { %8206 = vmatmul.mubr.f32.vlgmr.msra.gmra.mrb[12].mxu0 %v10056_v30  ;;  %v5040_v2 = vand.u32 4294901760, %v5039_v16  ;;  %v9081_v30 = vpack.c.bf16 %v5045_v43, %v5038_v50  ;;  %v10988_v43 = vpack.c.bf16 %v6073_v11, %v6070_v49  ;;  %v10992_v16 = vld [vmem:[#allocation5 + $0x20] sm:$0xff] }
 0x7c2   : > { %8208 = vmatprep.mubr.f32.mxu0 %v10060_v32  ;;  %v11552_v32 = vld [vmem:[#allocation18_spill] sm:$0xff] }
 0x7c3   : > { %v9069_v41 = vpack.c.bf16 %v5047_v44, %v5040_v2  ;;  %v10994_v44 = vld [vmem:[#allocation5 + $0x28] sm:$0xff] }
 0x7c5   : > { %8209 = vmatmul.mubr.f32.gmra.mrb[14].mxu0 %v10065_v33  ;;  %9070 = vmatprep.subr.bf16.mxu0 %v9069_v41  ;;  %v11553_v33 = vld [vmem:[#allocation17_spill] sm:$0xff] }
 0x7c6   : > { %9072 = vmatpush3.bf16.msra.mxu0 %v9069_v41  ;;  %8215 = vmatprep.mubr.msk.f32.mxu0 %vm1251_vm2, %v10013_v7  ;;  %v6082_v41 = vand.u32 4294901760, %v10992_v16 }
 0x7c7   : > { %9074 = vmatprep.subr.bf16.mxu0 %v9073_v5 }
 0x7c9   : > { %8216 = vmatmul.mubr.msk.f32.vlgmr.msra.gmra.mrb[12].mxu0 %vm1251_vm2, %v10027_v17 }
 0x7ca   : > { %8218 = vmatprep.mubr.msk.f32.mxu0 %vm1251_vm2, %v10008_v4  ;;  %9076 = vmatpush3.bf16.msra.mxu0 %v9073_v5  ;;  %v6085_v5 = vand.u32 4294901760, %v10994_v44 }
 0x7cb   : > { %9078 = vmatprep.subr.bf16.mxu0 %v9065_v55 }
 0x7cd   : > { %8219 = vmatmul.mubr.msk.f32.gmra.mrb[14].mxu0 %vm1251_vm2, %v10020_v13 }
 0x7ce   : > { %8225 = vmatprep.mubr.f32.mxu0 %v10022_v15 }
 0x7d1   : > { %8226 = vmatmul.mubr.f32.vlgmr.msra.gmra.mrb[12].mxu0 %v10041_v23 }
 0x7d2   : > { %9080 = vmatpush3.bf16.msra.mxu0 %v9065_v55  ;;  %8228 = vmatprep.mubr.f32.mxu0 %v10017_v10  ;;  %v11557_v10 = vld [vmem:[#allocation26_spill] sm:$0xff] }
 0x7d3   : > { %9082 = vmatprep.subr.bf16.mxu0 %v9081_v30 }
 0x7d5   : > { %8229 = vmatmul.mubr.f32.gmra.mrb[14].mxu0 %v11552_v32  ;;  %v11007_v32 = vld [vmem:[#allocation5 + $0x38] sm:$0xff] }
 0x7d6   : > { %8235 = vmatprep.mubr.f32.mxu0 %v11553_v33  ;;  %v11017_v33 = vpack.c.bf16 %v6085_v5, %v6082_v41 }
 0x7d9   : > { %8236 = vmatmul.mubr.f32.vlgmr.msra.gmra.mrb[12].mxu0 %v11554_v60 }
 0x7da   : > { %9084 = vmatpush3.bf16.msra.mxu0 %v9081_v30  ;;  %8238 = vmatprep.mubr.f32.mxu0 %v11555_v59  ;;  %v11005_v30 = vld [vmem:[#allocation5 + $0x30] sm:$0xff]  ;;  %v6091_v59 = vand.u32 4294901760, %v11007_v32 }
 0x7db   : > { %9086 = vmatprep.subr.bf16.mxu0 %v9065_v55  ;;  %v6088_v60 = vand.u32 4294901760, %v11005_v30 }
 0x7dd   : > { %8239 = vmatmul.mubr.f32.gmra.mrb[14].mxu0 %v11556_v21  ;;  %v11027_v21 = vpack.c.bf16 %v6091_v59, %v6088_v60 }
 0x7de   : > { %8245 = vmatprep.mubr.msk.f32.mxu0 %vm1251_vm2, %v10013_v7 }
 0x7e1   : > { %8246 = vmatmul.mubr.msk.f32.vlgmr.msra.gmra.mrb[12].mxu0 %vm1251_vm2, %v10027_v17 }
 0x7e2   : > { %9088 = vmatpush3.bf16.msra.mxu0 %v9065_v55  ;;  %8248 = vmatprep.mubr.msk.f32.mxu0 %vm1251_vm2, %v10008_v4  ;;  %v10979_v55 = vld [vmem:[#allocation5 + $0x10] sm:$0xff] }
 0x7e3   : > { %v6076_v50 = vand.u32 4294901760, %v10979_v55 }
 0x7e5   : > { %8249 = vmatmul.mubr.msk.f32.gmra.mrb[14].mxu0 %vm1251_vm2, %v10020_v13  ;;  %v11001_v2 = vpack.c.bf16 %v6079_v63, %v6076_v50 }
 0x7e6   : > { %8255 = vmatprep.mubr.msk.f32.mxu0 %vm1251_vm2, %v10013_v7 }
 0x7e9   : > { %8256 = vmatmul.mubr.msk.f32.vlgmr.msra.gmra.mrb[12].mxu0 %vm1251_vm2, %v10027_v17 }
 0x7ea   : > { %8258 = vmatprep.mubr.msk.f32.mxu0 %vm1251_vm2, %v10008_v4 }
 0x7ed   : > { %8259 = vmatmul.mubr.msk.f32.gmra.mrb[14].mxu0 %vm1251_vm2, %v10020_v13 }
 0x7ee   : > { %8269 = vmatprep.mubr.f32.mxu0 %v11557_v10  ;;  %v6054_v10 = vld [vmem:[#allocation5 + $0x40] sm:$0xff] }
 0x8bc   : > { %v8257_v15 = vpop.f32.mrb[12].mxu0 }
 0x8bd   : > { %v5520_v23 = vand.u32 4294901760, %v8257_v15  ;;  %v5494_v28 = vpop.f32.mrb[13].mxu0 }
 0x8be   : > { %v5517_v37 = vand.u32 4294901760, %v5494_v28 }
 0x8bf   : > { %v5614_v56 = vsub.f32 %v8257_v15, %v5520_v23  ;;  %v6055_v15 = vld [vmem:[#allocation5 + $0x48] sm:$0xff] }
 0x8c0   : > { %v10961_v38 = vpack.c.bf16 %v5520_v23, %v5517_v37  ;;  %v5607_v34 = vsub.f32 %v5494_v28, %v5517_v37  ;;  %v8260_v7 = vpop.f32.mrb[14].mxu0  ;;  %v6094_v23 = vand.u32 4294901760, %v6054_v10  ;;  %v6097_v28 = vand.u32 4294901760, %v6055_v15 }
 0x8c1   : > { %v5615_v6 = vand.u32 4294901760, %v5614_v56  ;;  %v5526_v36 = vand.u32 4294901760, %v8260_v7  ;;  %v5506_v17 = vpop.f32.mrb[15].mxu0 }
 0x8c2   : > { %v5608_v51 = vand.u32 4294901760, %v5607_v34  ;;  %v5523_v27 = vand.u32 4294901760, %v5506_v17  ;;  %9090 = vmatprep.subr.bf16.mxu0 %v10961_v38  ;;  %v9105_v4 = vpack.c.bf16 %v5614_v56, %v5607_v34  ;;  %v11032_v37 = vpack.c.bf16 %v6097_v28, %v6094_v23 }
 0x8c3   : > { %v5616_v13 = vsub.f32 %v5614_v56, %v5615_v6  ;;  %v5628_v31 = vsub.f32 %v8260_v7, %v5526_v36  ;;  %9092 = vmatpush3.bf16.msra.mxu0 %v10961_v38  ;;  %v6056_v56 = vld [vmem:[#allocation5 + $0x50] sm:$0xff] }
 0x8c4   : > { %v5609_v54 = vsub.f32 %v5607_v34, %v5608_v51  ;;  %v9093_v12 = vpack.c.bf16 %v5526_v36, %v5523_v27  ;;  %v5621_v42 = vsub.f32 %v5506_v17, %v5523_v27  ;;  %v9121_v19 = vpack.c.bf16 %v5615_v6, %v5608_v51  ;;  %v6058_v36 = vld [vmem:[#allocation5 + $0x60] sm:$0xff]  ;;  %v6059_v17 = vld [vmem:[#allocation5 + $0x68] sm:$0xff] }
 0x8c5   : > { %v5629_v29 = vand.u32 4294901760, %v5628_v31  ;;  %v5617_v18 = vand.u32 4294901760, %v5616_v13  ;;  %v6100_v34 = vand.u32 4294901760, %v6056_v56  ;;  %v6106_v51 = vand.u32 4294901760, %v6058_v36 }
 0x8c6   : > { %v5622_v52 = vand.u32 4294901760, %v5621_v42  ;;  %9094 = vmatprep.subr.bf16.mxu0 %v9093_v12  ;;  %v5610_v20 = vand.u32 4294901760, %v5609_v54  ;;  %v9109_v22 = vpack.c.bf16 %v5628_v31, %v5621_v42  ;;  %v6109_v27 = vand.u32 4294901760, %v6059_v17  ;;  %v6060_v54 = vld [vmem:[#allocation5 + $0x70] sm:$0xff] }
 0x8c7   : > { %v5630_v3 = vsub.f32 %v5628_v31, %v5629_v29  ;;  %9096 = vmatpush3.bf16.msra.mxu0 %v9093_v12  ;;  %v11042_v13 = vsub.f32 %v6046_v53, %v6070_v49  ;;  %v11044_v31 = vsub.f32 %v6047_v35, %v6073_v11  ;;  %v11087_v11 = vsub.f32 %v6058_v36, %v6106_v51 }
 0x8c8   : > { %v5623_v46 = vsub.f32 %v5621_v42, %v5622_v52  ;;  %v9097_v25 = vpack.c.bf16 %v5617_v18, %v5610_v20  ;;  %v9125_v24 = vpack.c.bf16 %v5629_v29, %v5622_v52  ;;  %v6112_v42 = vand.u32 4294901760, %v6060_v54 }
 0x8c9   : > { %v5631_v1 = vand.u32 4294901760, %v5630_v3  ;;  %v6173_v29 = vand.u32 4294901760, %v11042_v13  ;;  %v6180_v18 = vand.u32 4294901760, %v11044_v31 }
 0x8ca   : > { %8270 = vmatmul.mubr.f32.vlgmr.msra.gmra.mrb[16].mxu0 %v11558_v47  ;;  %9098 = vmatprep.subr.bf16.mxu0 %v9097_v25  ;;  %v5624_v62 = vand.u32 4294901760, %v5623_v46 }
 0x8cb   : > { %9100 = vmatpush3.bf16.msra.mxu0 %v9097_v25  ;;  %8280 = vmatprep.mubr.msk.f32.mxu0 %vm1856_vm7, %v11559_v8  ;;  %v6174_v20 = vsub.f32 %v11042_v13, %v6173_v29 }
 0x8cc   : > { %v9101_v0 = vpack.c.bf16 %v5631_v1, %v5624_v62  ;;  %v11065_v1 = vsub.f32 %v6055_v15, %v6097_v28 }
 0x8cd   : > { %v6175_v3 = vand.u32 4294901760, %v6174_v20 }
 0x8ce   : > { %9102 = vmatprep.subr.bf16.mxu0 %v9101_v0  ;;  %v6236_v62 = vand.u32 4294901760, %v11065_v1 }
 0x8cf   : > { %9104 = vmatpush3.bf16.msra.mxu0 %v9101_v0  ;;  %v11072_v0 = vsub.f32 %v6056_v56, %v6100_v34  ;;  %v11453_v56 = vand.u32 4294901760, %v11087_v11 }
 0x8d0   : > { %9106 = vmatprep.subr.bf16.mxu0 %v9105_v4 }
 0x8d2   : > { %8281 = vmatmul.mubr.msk.f32.vlgmr.msra.gmra.mrb[16].mxu0 %vm1856_vm7, %v11560_v48 }
 0x8d3   : > { %9108 = vmatpush3.bf16.msra.mxu0 %v9105_v4  ;;  %8291 = vmatprep.mubr.f32.mxu0 %v11561_v26  ;;  %v11040_v4 = vpack.c.bf16 %v6109_v27, %v6106_v51  ;;  %v6237_v26 = vsub.f32 %v11065_v1, %v6236_v62 }
 0x8d4   : > { %9110 = vmatprep.subr.bf16.mxu0 %v9109_v22 }
 0x8d5   : > { %v6238_v53 = vand.u32 4294901760, %v6237_v26 }
 0x8d7   : > { %9112 = vmatpush3.bf16.msra.mxu0 %v9109_v22  ;;  %v6181_v22 = vsub.f32 %v11044_v31, %v6180_v18 }
 0x8d8   : > { %9114 = vmatprep.subr.bf16.mxu0 %v10961_v38 }
 0x8d9   : > { %v6182_v46 = vand.u32 4294901760, %v6181_v22 }
 0x8da   : > { %8292 = vmatmul.mubr.f32.vlgmr.msra.gmra.mrb[16].mxu0 %v11562_v39 }
 0x8db   : > { %9116 = vmatpush3.bf16.msra.mxu0 %v10961_v38  ;;  %8302 = vmatprep.mubr.f32.mxu0 %v11563_v9  ;;  %v11060_v25 = vpack.c.bf16 %v6182_v46, %v6175_v3  ;;  %v6243_v9 = vand.u32 4294901760, %v11072_v0 }
 0x8dc   : > { %9118 = vmatprep.subr.bf16.mxu0 %v9093_v12 }
 0x8dd   : > { %v6244_v35 = vsub.f32 %v11072_v0, %v6243_v9 }
 0x8df   : > { %9120 = vmatpush3.bf16.msra.mxu0 %v9093_v12 }
 0x8e0   : > { %9122 = vmatprep.subr.bf16.mxu0 %v9121_v19 }
 0x8e2   : > { %8303 = vmatmul.mubr.f32.vlgmr.msra.gmra.mrb[16].mxu0 %v11564_v45 }
 0x8e3   : > { %9124 = vmatpush3.bf16.msra.mxu0 %v9121_v19  ;;  %8313 = vmatprep.mubr.msk.f32.mxu0 %vm1856_vm7, %v11559_v8 }
 0x8e4   : > { %9126 = vmatprep.subr.bf16.mxu0 %v9125_v24 }
 0x8e7   : > { %9128 = vmatpush3.bf16.msra.mxu0 %v9125_v24  ;;  %v11063_v24 = vsub.f32 %v6054_v10, %v6094_v23  ;;  %v11089_v10 = vsub.f32 %v6059_v17, %v6109_v27  ;;  %v6245_v23 = vand.u32 4294901760, %v6244_v35  ;;  %v11103_v17 = vsub.f32 %v6060_v54, %v6112_v42 }
 0x8e8   : > { %9130 = vmatprep.subr.bf16.mxu0 %v10961_v38 }
 0x8e9   : > { %v6229_v47 = vand.u32 4294901760, %v11063_v24  ;;  %v11451_v22 = vand.u32 4294901760, %v11103_v17  ;;  %v11133_v35 = vpack.c.bf16 %v11089_v10, %v11087_v11 }
 0x8ea   : > { %8314 = vmatmul.mubr.msk.f32.vlgmr.msra.gmra.mrb[16].mxu0 %vm1856_vm7, %v11560_v48 }
 0x8eb   : > { %9132 = vmatpush3.bf16.msra.mxu0 %v10961_v38  ;;  %8324 = vmatprep.mubr.msk.f32.mxu0 %vm1856_vm7, %v11559_v8  ;;  %v6057_v38 = vld [vmem:[#allocation5 + $0x58] sm:$0xff]  ;;  %v6230_v8 = vsub.f32 %v11063_v24, %v6229_v47 }
 0x8ec   : > { %9134 = vmatprep.subr.bf16.mxu0 %v9093_v12  ;;  %v6103_v7 = vand.u32 4294901760, %v6057_v38 }
 0x8ed   : > { %v6231_v39 = vand.u32 4294901760, %v6230_v8  ;;  %v6272_v8 = vsub.f32 %v11103_v17, %v11451_v22 }
 0x8ee   : > { %v11036_v6 = vpack.c.bf16 %v6103_v7, %v6100_v34 }
 0x8ef   : > { %9136 = vmatpush3.bf16.msra.mxu0 %v9093_v12  ;;  %v6061_v12 = vld [vmem:[#allocation5 + $0x78] sm:$0xff]  ;;  %v11091_v15 = vpack.c.bf16 %v6238_v53, %v6231_v39  ;;  %v6273_v54 = vand.u32 4294901760, %v6272_v8  ;;  %v11125_v39 = vpack.c.bf16 %v11065_v1, %v11063_v24  ;;  %v11568_v24 = vand.u32 4294901760, %v11103_v17 }
 0x8f0   : > { %9138 = vmatprep.subr.bf16.mxu0 %v10988_v43  ;;  %v6115_v19 = vand.u32 4294901760, %v6061_v12 }
 0x8f2   : > { %8325 = vmatmul.mubr.msk.f32.vlgmr.msra.gmra.mrb[16].mxu0 %vm1856_vm7, %v11560_v48  ;;  %v11050_v52 = vpack.c.bf16 %v6115_v19, %v6112_v42  ;;  %v11074_v48 = vsub.f32 %v6057_v38, %v6103_v7  ;;  %v11452_v38 = vand.u32 4294901760, %v11089_v10  ;;  %v6258_v7 = vsub.f32 %v11087_v11, %v11453_v56 }
 0x8f3   : > { %9140 = vmatpush3.bf16.msra.mxu0 %v10988_v43  ;;  %v11105_v51 = vsub.f32 %v6061_v12, %v6115_v19  ;;  %v11121_v19 = vpack.c.bf16 %v11044_v31, %v11042_v13 }
 0x8f4   : > { %9142 = vmatprep.subr.bf16.mxu0 %v11001_v2  ;;  %v11454_v45 = vand.u32 4294901760, %v11074_v48  ;;  %v6265_v36 = vsub.f32 %v11089_v10, %v11452_v38  ;;  %v6259_v27 = vand.u32 4294901760, %v6258_v7  ;;  %v11129_v53 = vpack.c.bf16 %v11074_v48, %v11072_v0 }
 0x8f5   : > { %v11450_v3 = vand.u32 4294901760, %v11105_v51  ;;  %v11569_v1 = vand.u32 4294901760, %v11105_v51 }
 0x8f6   : > { %v6251_v49 = vsub.f32 %v11074_v48, %v11454_v45  ;;  %v6266_v20 = vand.u32 4294901760, %v6265_v36 }
 0x8f7   : > { %9144 = vmatpush3.bf16.msra.mxu0 %v11001_v2  ;;  %v6279_v26 = vsub.f32 %v11105_v51, %v11450_v3 }
 0x8f8   : > { %9146 = vmatprep.subr.bf16.mxu0 %v11017_v33  ;;  %v6252_v28 = vand.u32 4294901760, %v6251_v49  ;;  %v11109_v46 = vpack.c.bf16 %v6266_v20, %v6259_v27  ;;  %v11137_v49 = vpack.c.bf16 %v11105_v51, %v11103_v17 }
 0x8f9   : > { %v6280_v42 = vand.u32 4294901760, %v6279_v26 }
 0x8fa   : > { %v11095_v34 = vpack.c.bf16 %v6252_v28, %v6245_v23  ;;  %v11142_v23 = vsub.f32 %v10979_v55, %v6076_v50  ;;  %v11147_v28 = vsub.f32 %v10981_v61, %v6079_v63  ;;  %v11156_v55 = vsub.f32 %v10992_v16, %v6082_v41 }
 0x8fb   : > { %9148 = vmatpush3.bf16.msra.mxu0 %v11017_v33  ;;  %v11117_v12 = vpack.c.bf16 %v6280_v42, %v6273_v54  ;;  %v11162_v61 = vsub.f32 %v10994_v44, %v6085_v5  ;;  %v11188_v5 = vsub.f32 %v11007_v32, %v6091_v59 }
 0x8fc   : > { %9150 = vmatprep.subr.bf16.mxu0 %v11027_v21  ;;  %v6187_v8 = vand.u32 4294901760, %v11142_v23  ;;  %v6194_v26 = vand.u32 4294901760, %v11147_v28 }
 0x8fd   : > { %v6208_v44 = vand.u32 4294901760, %v11162_v61  ;;  %v6222_v59 = vand.u32 4294901760, %v11188_v5 }
 0x8fe   : > { %v6188_v54 = vsub.f32 %v11142_v23, %v6187_v8  ;;  %v6195_v16 = vsub.f32 %v11147_v28, %v6194_v26 }
 0x8ff   : > { %9152 = vmatpush3.bf16.msra.mxu0 %v11027_v21  ;;  %v6209_v32 = vsub.f32 %v11162_v61, %v6208_v44  ;;  %v6223_v45 = vsub.f32 %v11188_v5, %v6222_v59 }
 0x900   : > { %9154 = vmatprep.subr.bf16.mxu0 %v11032_v37 }
 0x901   : > { %v6210_v38 = vand.u32 4294901760, %v6209_v32 }
 0x903   : > { %9156 = vmatpush3.bf16.msra.mxu0 %v11032_v37 }
 0x904   : > { %9158 = vmatprep.subr.bf16.mxu0 %v11036_v6 }
 0x907   : > { %9160 = vmatpush3.bf16.msra.mxu0 %v11036_v6 }
 0x908   : > { %9162 = vmatprep.subr.bf16.mxu0 %v11040_v4 }
 0x90b   : > { %9164 = vmatpush3.bf16.msra.mxu0 %v11040_v4 }
 0x90c   : > { %9166 = vmatprep.subr.bf16.mxu0 %v11050_v52 }
 0x90f   : > { %9168 = vmatpush3.bf16.msra.mxu0 %v11050_v52 }
 0x910   : > { %9170 = vmatprep.subr.bf16.mxu0 %v11060_v25 }
 0x9c5   : > { %v8326_v7 = vpop.f32.mrb[16].mxu0 }
 0x9c6   : > { %v9345_v36 = vadd.f32 %v8326_v7, %v10916_v58  ;;  %v6034_v27 = vpop.f32.mrb[17].mxu0 }
 0x9c7   : > { %v9346_v20 = vadd.f32 %v6034_v27, %v10919_v14  ;;  %v6189_v27 = vand.u32 4294901760, %v6188_v54 }
 0x9c8   : > { %v6045_v50 = vmul.f32 %v9345_v36, %v10911_v40  ;;  %v6201_v40 = vand.u32 4294901760, %v11156_v55 }
 0x9c9   : > { %v6044_v58 = vmul.f32 %v9346_v20, %v10913_v57  ;;  %v11183_v57 = vsub.f32 %v11005_v30, %v6088_v60  ;;  %v6196_v20 = vand.u32 4294901760, %v6195_v16 }
 0x9ca   : > { %v11165_v63 = vand.u32 4294901760, %v6045_v50  ;;  %v9273_v13 = vpack.c.bf16 %v6208_v44, %v6201_v40 }
 0x9cb   : > { %v11167_v14 = vand.u32 4294901760, %v6044_v58  ;;  %v6215_v60 = vand.u32 4294901760, %v11183_v57  ;;  %v9173_v16 = vpack.c.bf16 %v6196_v20, %v6189_v27  ;;  %v6224_v20 = vand.u32 4294901760, %v6223_v45 }
 0x9cc   : > { %v11177_v41 = vsub.f32 %v6045_v50, %v11165_v63  ;;  %v6202_v50 = vsub.f32 %v11156_v55, %v6201_v40  ;;  %v9209_v45 = vpack.c.bf16 %v11162_v61, %v11156_v55 }
 0x9cd   : > { %v11191_v42 = vsub.f32 %v6044_v58, %v11167_v14  ;;  %v6216_v56 = vsub.f32 %v11183_v57, %v6215_v60  ;;  %v9277_v31 = vpack.c.bf16 %v6222_v59, %v6215_v60 }
 0x9ce   : > { %v6162_v7 = vand.u32 4294901760, %v11177_v41  ;;  %v6203_v3 = vand.u32 4294901760, %v6202_v50 }
 0x9cf   : > { %v6152_v36 = vand.u32 4294901760, %v11191_v42  ;;  %v6217_v27 = vand.u32 4294901760, %v6216_v56  ;;  %v9265_v56 = vpack.c.bf16 %v6180_v18, %v6173_v29  ;;  %v9281_v29 = vpack.c.bf16 %v6236_v62, %v6229_v47 }
 0x9d0   : > { %v6163_v30 = vsub.f32 %v11177_v41, %v6162_v7  ;;  %v11565_v18 = vand.u32 4294901760, %v11074_v48  ;;  %v9293_v47 = vpack.c.bf16 %v11569_v1, %v11568_v24 }
 0x9d1   : > { %v6153_v58 = vsub.f32 %v11191_v42, %v6152_v36  ;;  %v9181_v50 = vpack.c.bf16 %v6224_v20, %v6217_v27 }
 0x9d2   : > { %v6164_v22 = vand.u32 4294901760, %v6163_v30 }
 0x9d3   : > { %v6154_v54 = vand.u32 4294901760, %v6153_v58  ;;  %v9177_v58 = vpack.c.bf16 %v6210_v38, %v6203_v3  ;;  %v9269_v38 = vpack.c.bf16 %v6194_v26, %v6187_v8  ;;  %v11567_v3 = vand.u32 4294901760, %v11089_v10 }
 0x9d5   : > { %8359 = vmatprep.mubr.f32.mxu0 %v6154_v54 }
 0x9d6   : > { %8360 = vmatmul.mubr.f32.vlgmr.msra.gmra.mrb[18].mxu0 %v6164_v22  ;;  %v11566_v22 = vand.u32 4294901760, %v11087_v11 }
 0x9d7   : > { %9172 = vmatpush3.bf16.msra.mxu0 %v11060_v25  ;;  %8394 = vmatprep.mubr.f32.mxu0 %v11167_v14  ;;  %v9205_v25 = vpack.c.bf16 %v11147_v28, %v11142_v23 }
 0x9d8   : > { %9174 = vmatprep.subr.bf16.mxu0 %v9173_v16 }
 0x9db   : > { %9176 = vmatpush3.bf16.msra.mxu0 %v9173_v16 }
 0x9dc   : > { %9178 = vmatprep.subr.bf16.mxu0 %v9177_v58 }
 0x9df   : > { %9180 = vmatpush3.bf16.msra.mxu0 %v9177_v58 }
 0x9e0   : > { %9182 = vmatprep.subr.bf16.mxu0 %v9181_v50 }
 0x9e3   : > { %9184 = vmatpush3.bf16.msra.mxu0 %v9181_v50 }
 0x9e4   : > { %9186 = vmatprep.subr.bf16.mxu0 %v11091_v15 }
 0x9e7   : > { %9188 = vmatpush3.bf16.msra.mxu0 %v11091_v15  ;;  %v9213_v15 = vpack.c.bf16 %v11188_v5, %v11183_v57 }
 0x9e8   : > { %9190 = vmatprep.subr.bf16.mxu0 %v11095_v34 }
 0x9eb   : > { %9192 = vmatpush3.bf16.msra.mxu0 %v11095_v34  ;;  %v9285_v34 = vpack.c.bf16 %v11565_v18, %v6243_v9 }
 0x9ec   : > { %9194 = vmatprep.subr.bf16.mxu0 %v11109_v46 }
 0x9ef   : > { %9196 = vmatpush3.bf16.msra.mxu0 %v11109_v46  ;;  %v9289_v46 = vpack.c.bf16 %v11567_v3, %v11566_v22 }
 0x9f0   : > { %9198 = vmatprep.subr.bf16.mxu0 %v11117_v12 }
 0x9f3   : > { %9200 = vmatpush3.bf16.msra.mxu0 %v11117_v12 }
 0x9f4   : > { %9202 = vmatprep.subr.bf16.mxu0 %v11121_v19 }
 0x9f6   : > { %8395 = vmatmul.mubr.f32.vlgmr.msra.gmra.mrb[18].mxu0 %v11165_v63 }
 0x9f7   : > { %9204 = vmatpush3.bf16.msra.mxu0 %v11121_v19  ;;  %8429 = vmatprep.mubr.f32.mxu0 %v11191_v42 }
 0x9f8   : > { %9206 = vmatprep.subr.bf16.mxu0 %v9205_v25 }
 0x9fb   : > { %9208 = vmatpush3.bf16.msra.mxu0 %v9205_v25 }
 0x9fc   : > { %9210 = vmatprep.subr.bf16.mxu0 %v9209_v45 }
 0x9ff   : > { %9212 = vmatpush3.bf16.msra.mxu0 %v9209_v45 }
 0xa00   : > { %9214 = vmatprep.subr.bf16.mxu0 %v9213_v15 }
 0xa03   : > { %9216 = vmatpush3.bf16.msra.mxu0 %v9213_v15 }
 0xa04   : > { %9218 = vmatprep.subr.bf16.mxu0 %v11125_v39 }
 0xa07   : > { %9220 = vmatpush3.bf16.msra.mxu0 %v11125_v39 }
 0xa08   : > { %9222 = vmatprep.subr.bf16.mxu0 %v11129_v53 }
 0xa0b   : > { %9224 = vmatpush3.bf16.msra.mxu0 %v11129_v53 }
 0xa0c   : > { %9226 = vmatprep.subr.bf16.mxu0 %v11133_v35 }
 0xa0f   : > { %9228 = vmatpush3.bf16.msra.mxu0 %v11133_v35 }
 0xa10   : > { %9230 = vmatprep.subr.bf16.mxu0 %v11137_v49 }
 0xa13   : > { %9232 = vmatpush3.bf16.msra.mxu0 %v11137_v49 }
 0xa14   : > { %9234 = vmatprep.subr.bf16.mxu0 %v10988_v43 }
 0xa16   : > { %8430 = vmatmul.mubr.f32.vlgmr.msra.gmra.mrb[18].mxu0 %v11177_v41 }
 0xa17   : > { %9236 = vmatpush3.bf16.msra.mxu0 %v10988_v43  ;;  %8464 = vmatprep.mubr.f32.mxu0 %v6152_v36 }
 0xa18   : > { %9238 = vmatprep.subr.bf16.mxu0 %v11001_v2 }
 0xa1b   : > { %9240 = vmatpush3.bf16.msra.mxu0 %v11001_v2 }
 0xa1c   : > { %9242 = vmatprep.subr.bf16.mxu0 %v11017_v33 }
 0xa1f   : > { %9244 = vmatpush3.bf16.msra.mxu0 %v11017_v33 }
 0xa20   : > { %9246 = vmatprep.subr.bf16.mxu0 %v11027_v21 }
 0xa23   : > { %9248 = vmatpush3.bf16.msra.mxu0 %v11027_v21 }
 0xa24   : > { %9250 = vmatprep.subr.bf16.mxu0 %v11032_v37 }
 0xa27   : > { %9252 = vmatpush3.bf16.msra.mxu0 %v11032_v37 }
 0xa28   : > { %9254 = vmatprep.subr.bf16.mxu0 %v11036_v6 }
 0xa2b   : > { %9256 = vmatpush3.bf16.msra.mxu0 %v11036_v6 }
 0xa2c   : > { %9258 = vmatprep.subr.bf16.mxu0 %v11040_v4 }
 0xa2f   : > { %9260 = vmatpush3.bf16.msra.mxu0 %v11040_v4 }
 0xa30   : > { %9262 = vmatprep.subr.bf16.mxu0 %v11050_v52 }
 0xa33   : > { %9264 = vmatpush3.bf16.msra.mxu0 %v11050_v52 }
 0xa34   : > { %9266 = vmatprep.subr.bf16.mxu0 %v9265_v56 }
 0xa36   : > { %8465 = vmatmul.mubr.f32.vlgmr.msra.gmra.mrb[18].mxu0 %v6162_v7 }
 0xa37   : > { %9268 = vmatpush3.bf16.msra.mxu0 %v9265_v56  ;;  %8499 = vmatprep.mubr.f32.mxu0 %v11167_v14 }
 0xa38   : > { %9270 = vmatprep.subr.bf16.mxu0 %v9269_v38 }
 0xa3b   : > { %9272 = vmatpush3.bf16.msra.mxu0 %v9269_v38 }
 0xa3c   : > { %9274 = vmatprep.subr.bf16.mxu0 %v9273_v13 }
 0xa3f   : > { %9276 = vmatpush3.bf16.msra.mxu0 %v9273_v13 }
 0xa40   : > { %9278 = vmatprep.subr.bf16.mxu0 %v9277_v31 }
 0xa43   : > { %9280 = vmatpush3.bf16.msra.mxu0 %v9277_v31 }
 0xa44   : > { %9282 = vmatprep.subr.bf16.mxu0 %v9281_v29 }
 0xa47   : > { %9284 = vmatpush3.bf16.msra.mxu0 %v9281_v29 }
 0xa48   : > { %9286 = vmatprep.subr.bf16.mxu0 %v9285_v34 }
 0xa4b   : > { %9288 = vmatpush3.bf16.msra.mxu0 %v9285_v34 }
 0xa4c   : > { %9290 = vmatprep.subr.bf16.mxu0 %v9289_v46 }
 0xa4f   : > { %9292 = vmatpush3.bf16.msra.mxu0 %v9289_v46 }
 0xa50   : > { %9294 = vmatprep.subr.bf16.mxu0 %v9293_v47 }
 0xa53   : > { %9296 = vmatpush3.bf16.msra.mxu0 %v9293_v47 }
 0xa54   : > { %9298 = vmatprep.subr.bf16.mxu0 %v10988_v43 }
 0xa56   : > { %8500 = vmatmul.mubr.f32.vlgmr.msra.gmra.mrb[18].mxu0 %v11165_v63 }
 0xa57   : > { %9300 = vmatpush3.bf16.msra.mxu0 %v10988_v43  ;;  %8534 = vmatprep.mubr.f32.mxu0 %v11167_v14  ;;  %v6978_v43 = vld [vmem:[%s11377_s12] ss:$0 sm:$0xff] }
 0xa58   : > { %9302 = vmatprep.subr.bf16.mxu0 %v11001_v2 }
 0xa5b   : > { %9304 = vmatpush3.bf16.msra.mxu0 %v11001_v2 }
 0xa5c   : > { %9306 = vmatprep.subr.bf16.mxu0 %v11017_v33 }
 0xa5f   : > { %9308 = vmatpush3.bf16.msra.mxu0 %v11017_v33 }
 0xa60   : > { %9310 = vmatprep.subr.bf16.mxu0 %v11027_v21 }
 0xa63   : > { %9312 = vmatpush3.bf16.msra.mxu0 %v11027_v21 }
 0xa64   : > { %9314 = vmatprep.subr.bf16.mxu0 %v11032_v37 }
 0xa67   : > { %9316 = vmatpush3.bf16.msra.mxu0 %v11032_v37 }
 0xa68   : > { %9318 = vmatprep.subr.bf16.mxu0 %v11036_v6 }
 0xa6b   : > { %9320 = vmatpush3.bf16.msra.mxu0 %v11036_v6 }
 0xa6c   : > { %9322 = vmatprep.subr.bf16.mxu0 %v11040_v4 }
 0xa6f   : > { %9324 = vmatpush3.bf16.msra.mxu0 %v11040_v4 }
 0xa70   : > { %9326 = vmatprep.subr.bf16.mxu0 %v11050_v52 }
 0xa73   : > { %9328 = vmatpush3.bf16.msra.mxu0 %v11050_v52 }
 0xa76   : > { %8535 = vmatmul.mubr.f32.vlgmr.msra.gmra.mrb[18].mxu0 %v11165_v63 }
 0xb49   : > { %v8536_v2 = vpop.f32.mrb[18].mxu0 }
 0xb4a   : > { %v9347_v33 = vadd.f32 %v8536_v2, %v6978_v43  ;;  %v6743_v21 = vpop.f32.mrb[19].mxu0 }
 0xb4b   : > { %v9348_v37 = vadd.f32 %v6978_v43, %v6743_v21 }
 0xb4c   : > { %6754 = vst [vmem:[%s519_s27 + $0x8] sm:$0xff] %v9347_v33 }
 0xb4d   : > { %6753 = vst [vmem:[%s519_s27] sm:$0xff] %v9348_v37 }
 0xb4e   : > { %9604 = shalt.err (!%p9601_p11)
}
 0xb4f   : > { %s9605_s20 = scalar_lea.hbm %s11322_s21, 256  ;;  %s9609_s15 = scalar_lea.hbm %s11570_s16, 512 }
 0xb50   : > { %p9606_p13 = scmp.ne.s32.totalorder %s11322_s21, %s9605_s20  ;;  %p9610_p6 = scmp.lt.u32.totalorder %s11322_s21, %s11570_s16 }
 0xb51   : > { %p9611_p9 = scmp.lt.u32.totalorder %s9609_s15, %s9605_s20  ;;  %p9613_p12 = scmp.lt.u32.totalorder %s9605_s20, %s11322_s21 }
 0xb52   : > { %p9607_p5 = pnand %p9606_p13, %p11571_p1 }
 0xb53   : > { %p9612_p10 = por %p9611_p9, %p9610_p6 }
 0xb54   : > { %p9608_p0 = pneg %p9607_p5 }
 0xb55   : > { %p9614_p2 = por %p9613_p12, %p9612_p10 }
 0xb57   : > { %p9615_p3 = pnand %p9614_p2, %p9608_p0 }
 0xb59   : > { %9618 = shalt.err (!%p9615_p3)
}
 0xb5a   : > { %s9670_s28 = smov 128   ;;  %s9671_s19 = smov 8  }
 0xb5b   : > { %9475 = dma.vmem_to_hbm [thread:$0]  (%p11571_p1), %s11317_s14, 256, %s11322_s21, %s11324_s24, %s9670_s28, %s9670_s28, %s9671_s19  }
 0xb5c PF: > { %s11572_s22 = sld [smem:[#allocation13_spill]]  ;;  %s11573_s29 = sld [smem:[#allocation11_spill]] }
 0xb5d   : > { %s11574_s13 = sld [smem:[#allocation16_spill]] }
 0xb62   : > { %p9492_p4 = scmp.ge.s32.totalorder %s11572_s22, 2  ;;  %s6784_s25 = sand.u32 1, %s11573_s29  }
 0xb63   : > { %p11575_p7 = scmp.ne.s32.totalorder %s11574_s13, 0  ;;  %s6785_s20 = scalar_lea.sflag [#allocation4], %s6784_s25 }
 0xb65   : > { %p9485_p8 = pnand %p9492_p4, %p11575_p7 }
 0xb67   : > { %9644 = dma.done.wait (!%p9485_p8), %s6785_s20, 256  }
 0xb68   : > { %9646 = vsyncadd (!%p9485_p8), %s6785_s20, 4294967040  ;;  %s11576_s28 = sld [smem:[#allocation14_spill]]  ;;  %s11577_s23 = sld [smem:[#allocation12_spill]] }
 0xb69   : > { %s11578_s27 = sld [smem:[#allocation15_spill]]  ;;  %s11579_s25 = smov %s9653_s26 }
 0xb6e   : > { %p25_p11 = scmp.ge.s32.totalorder %s11576_s28, 4   ;;  %s11580_s26 = smov %s11577_s23 }
 0xb70   :  { %27 = sbr.rel (!%p25_p11) target bundleno = 7 (0x7), region = 128 }
 0xb77   :  { %6790 = vsyncpa [#allocation3], 1 }
 0xb78   :  { %6792 = vsyncpa [#allocation3 + $0x1], 1 }
 0xb79   :  { %6793 = vsyncpa [#allocation6], 1 }
 0xb7a   :  { %6794 = vsyncpa [#allocation4], 1 }
 0xb7b   :  { %6796 = vsyncpa [#allocation4 + $0x1], 1 }

</bundles_post_ra>
